<compile_context>
chip_gen: v7x
topology: tpu7x:2x2x1
jax: 0.10.0
libtpu: 0.0.40
codegen_flags: <defaults>
</compile_context>

<pallas_src>
import math

import jax
import jax.numpy as jnp
from jax.experimental import pallas as pl
from jax.experimental.pallas import tpu as pltpu

LN_EPS = 1e-5
SQRT2 = math.sqrt(2.0)


# ---------------------------------------------------------------------------
# Math helpers (traced inside the Pallas kernel and in the references)
# ---------------------------------------------------------------------------
def _layernorm(x, eps=LN_EPS):
    mu = jnp.mean(x, axis=-1, keepdims=True)
    var = jnp.mean((x - mu) ** 2, axis=-1, keepdims=True)
    return (x - mu) * jax.lax.rsqrt(var + eps)


def _scaled_leaky_relu(x, slope=0.2):
    return jnp.where(x >= 0.0, x, x * slope) * SQRT2


def _tacc_block_math(x, embd, step, wx, wcm, wcs, vec, gw2, bw2):
    """One TACC_block forward on plain arrays (prepared / packed weights).

    Shared verbatim between the Pallas kernel body (values loaded from refs) and the
    pure-JAX reference, so the tight correctness check compares identical math.

      x, embd : (B, S, D) float          step : (B, 1, 1) float32
      wx      : (D, 4D) bf16  = [wk | wv | saq/sqrt(D) | sav]     (applied to pixelnorm(x))
      wcm     : (D, 4D) bf16  = [wq/sqrt(18) | sak | gw1 | bw1]   (applied to embd)
      wcs     : (1, 4D) f32     step row of the same packed matrix (rank-1 add)
      vec     : (8, D)  f32   = [gb1, glg, glb, gb2, bb1, blg, blb, bb2]
      gw2,bw2 : (D, D)  bf16
    """
    f32, bf16 = jnp.float32, jnp.bfloat16
    B, S, D = x.shape
    BS = B * S
    gb1, glg, glb, gb2 = vec[0:1], vec[1:2], vec[2:3], vec[3:4]
    bb1, blg, blb, bb2 = vec[4:5], vec[5:6], vec[6:7], vec[7:8]

    # PixelNorm over torch dim=1 (the S axis), in f32.
    x = x.astype(f32)
    x = x * jax.lax.rsqrt(jnp.mean(x * x, axis=1, keepdims=True) + 1e-8)

    # Packed projections with M = B*S rows (bf16 MXU feeds, f32 accumulation).
    xb = x.astype(bf16).reshape(BS, D)          # cast before reshape: half the relayout bytes
    eb = embd.astype(bf16).reshape(BS, D)
    xh = jnp.dot(xb, wx, preferred_element_type=f32).reshape(B, S, 4 * D)
    ch = jnp.dot(eb, wcm, preferred_element_type=f32).reshape(B, S, 4 * D)
    ch = ch + step.astype(f32) * wcs            # step column as a rank-1 broadcast add

    K = xh[..., 0 * D:1 * D]                    # TACC keys
    V = xh[..., 1 * D:2 * D]                    # TACC values
    qs = xh[..., 2 * D:3 * D]                   # spatial q (pre-scaled by 1/sqrt(D))
    vs = xh[..., 3 * D:4 * D]                   # spatial v
    Q = ch[..., 0 * D:1 * D]                    # TACC queries (pre-scaled by 1/sqrt(18))
    ks = ch[..., 1 * D:2 * D]                   # spatial k
    g = ch[..., 2 * D:3 * D] + gb1              # gamma branch pre-LN
    b = ch[..., 3 * D:4 * D] + bb1              # beta branch pre-LN

    # ---- TACC self-attention (softmax over keys); normalization deferred past PV ----
    s = jnp.einsum('bsd,btd->bst', K.astype(bf16), Q.astype(bf16),
                   preferred_element_type=f32)                      # (B,S,S)
    p = jnp.exp(s - jnp.max(s, axis=-1, keepdims=True))
    h = jnp.einsum('bst,btd->bsd', p.astype(bf16), V.astype(bf16),
                   preferred_element_type=f32)                      # (B,S,D)
    h = h * (1.0 / jnp.sum(p, axis=-1, keepdims=True))              # exact, tiny row sums

    # ---- spatial_attention(x, c); torch softmax over dim=1 == last axis of scT ----
    # scT[b,c,a] = sum_s qs[b,s,c] * ks[b,s,a]; the one small (S,D)->(D,S) swap keeps the
    # contraction in the canonical MXU form.
    q_t = jnp.swapaxes(qs.astype(bf16), 1, 2)                       # (B,D,S) bf16
    scT = jnp.einsum('bcs,bsa->bca', q_t, ks.astype(bf16),
                     preferred_element_type=f32)                    # (B,D,D)
    aT = jnp.exp(scT - jnp.max(scT, axis=-1, keepdims=True))
    # t_out[b,s,c] = sum_a vs[b,s,a] * att[b,a,c]; normalization deferred
    t_out = jnp.einsum('bsa,bca->bsc', vs.astype(bf16), aT.astype(bf16),
                       preferred_element_type=f32)                  # (B,S,D)
    t_out = t_out * (1.0 / jnp.sum(aT, axis=-1))[:, None, :]
    t_out = _layernorm(t_out)

    h = _layernorm(h + t_out)

    # ---- gamma: Linear -> LN(affine) -> ScaledLeakyReLU -> Linear -> Sigmoid ----
    g = _scaled_leaky_relu(_layernorm(g) * glg + glb)
    gamma = jax.nn.sigmoid(
        jnp.dot(g.astype(bf16).reshape(BS, D), gw2,
                preferred_element_type=f32).reshape(B, S, D) + gb2)

    # ---- beta: Linear -> LN(affine) -> ScaledLeakyReLU -> Linear -> ScaledLeakyReLU ----
    b = _scaled_leaky_relu(_layernorm(b) * blg + blb)
    beta = _scaled_leaky_relu(
        jnp.dot(b.astype(bf16).reshape(BS, D), bw2,
                preferred_element_type=f32).reshape(B, S, D) + bb2)

    return h * (1.0 + gamma) + beta


# ---------------------------------------------------------------------------
# Fused Pallas kernel: all blocks of one batch chunk, x resident in VMEM
# ---------------------------------------------------------------------------
def tacc_fused_kernel(x_ref, e_ref, step_ref,
                      wx_ref, wcm_ref, wcs_ref, vec_ref, gw2_ref, bw2_ref,
                      out_ref, xres_ref):
    j = pl.program_id(1)                         # block index (innermost grid axis)

    @pl.when(j == 0)
    def _():                                     # new batch chunk: load x into residency buffer
        xres_ref[...] = x_ref[...].astype(xres_ref.dtype)

    res = _tacc_block_math(xres_ref[...], e_ref[...], step_ref[...],
                           wx_ref[0], wcm_ref[0], wcs_ref[0], vec_ref[0],
                           gw2_ref[0], bw2_ref[0])

    xres_ref[...] = res                          # stays resident in VMEM for block j+1
    out_ref[...] = res.astype(out_ref.dtype)     # written back to HBM when the chunk changes


# ---------------------------------------------------------------------------
# Wrapper
# ---------------------------------------------------------------------------
def _pick_bt(B, max_bt=4):
    """Batch elements per grid step: a divisor of B, capped so the 'parallel' batch axis
    keeps >= 2 grid steps when B allows (feeds both v7x TensorCores)."""
    cap = max(1, min(max_bt, B // 2 if B >= 2 else 1))
    bt = 1
    for cand in range(1, cap + 1):
        if B % cand == 0:
            bt = cand
    return bt


def _vmem_limit_bytes():
    """Generation-aware VMEM budget: ~75% of physical (v5e/v6e: 128 MiB, v7x: 64 MiB)."""
    try:
        cap = int(pltpu.get_tpu_info().vmem_capacity_bytes)
        lim = (cap * 3) // 4
    except Exception:
        lim = 48 << 20
    return int(max(32 << 20, min(lim, 100 << 20)))


def code_diffuser_forward(x, embd, t, prep_list, max_period, max_bt=4):
    """N chained TACC blocks (Code_diffuser.forward) fused into one pallas_call.

    Grid = (batch_chunks, n_blocks); the block axis is innermost / 'arbitrary' so x stays
    resident in VMEM across all blocks of a batch chunk.  Per-block weights are stacked on
    a leading axis indexed by the block grid axis (double-buffered by the default pipeline,
    so the next block's weights stream in during compute).
    """
    B, S, D = x.shape
    nb = len(prep_list)
    step = (t.astype(jnp.float32) / float(max_period)).reshape(B, 1, 1)

    wx_all = jnp.stack([p["wx"] for p in prep_list])     # (nb, D, 4D) bf16
    wcm_all = jnp.stack([p["wcm"] for p in prep_list])   # (nb, D, 4D) bf16
    wcs_all = jnp.stack([p["wcs"] for p in prep_list])   # (nb, 1, 4D) f32
    vec_all = jnp.stack([p["vec"] for p in prep_list])   # (nb, 8, D)  f32
    gw2_all = jnp.stack([p["gw2"] for p in prep_list])   # (nb, D, D)  bf16
    bw2_all = jnp.stack([p["bw2"] for p in prep_list])   # (nb, D, D)  bf16

    bt = _pick_bt(B, max_bt)

    def batched(shape):                                   # constant in the block axis j
        nd = len(shape)
        return pl.BlockSpec((bt,) + tuple(shape[1:]),
                            lambda i, j, _nd=nd: (i,) + (0,) * (_nd - 1))

    def per_block(shape):                                 # indexed by the block axis j
        nd = len(shape)
        return pl.BlockSpec((1,) + tuple(shape[1:]),
                            lambda i, j, _nd=nd: (j,) + (0,) * (_nd - 1))

    return pl.pallas_call(
        tacc_fused_kernel,
        out_shape=jax.ShapeDtypeStruct(x.shape, x.dtype),
        grid=(B // bt, nb),
        in_specs=[batched(x.shape), batched(embd.shape), batched(step.shape),
                  per_block(wx_all.shape), per_block(wcm_all.shape),
                  per_block(wcs_all.shape), per_block(vec_all.shape),
                  per_block(gw2_all.shape), per_block(bw2_all.shape)],
        out_specs=batched(x.shape),
        scratch_shapes=[pltpu.VMEM((bt, S, D), jnp.float32)],   # x residency across blocks
        compiler_params=pltpu.CompilerParams(
            dimension_semantics=("parallel", "arbitrary"),
            vmem_limit_bytes=_vmem_limit_bytes()),
    )(x, embd, step, wx_all, wcm_all, wcs_all, vec_all, gw2_all, bw2_all)


# ---------------------------------------------------------------------------
# Parameter init (torch-like fp32) and kernel-side preparation (pack + fold + bf16)
# ---------------------------------------------------------------------------
def init_tacc_params(key, D):
    ks = jax.random.split(key, 16)

    def lin(k, fin, fout):  # stored already transposed: (in, out)
        return jax.random.normal(k, (fin, fout), jnp.float32) / jnp.sqrt(float(fin))

    def bias(k):
        return 0.01 * jax.random.normal(k, (1, D), jnp.float32)

    return {
        "wq": lin(ks[0], D + 1, D),
        "wk": lin(ks[1], D, D),
        "wv": lin(ks[2], D, D),
        "gw1": lin(ks[3], D + 1, D), "gb1": bias(ks[4]),
        "glg": jnp.ones((1, D), jnp.float32), "glb": jnp.zeros((1, D), jnp.float32),
        "gw2": lin(ks[5], D, D), "gb2": bias(ks[6]),
        "bw1": lin(ks[7], D + 1, D), "bb1": bias(ks[8]),
        "blg": jnp.ones((1, D), jnp.float32), "blb": jnp.zeros((1, D), jnp.float32),
        "bw2": lin(ks[9], D, D), "bb2": bias(ks[10]),
        "saq": lin(ks[11], D, D),
        "sak": lin(ks[12], D + 1, D),
        "sav": lin(ks[13], D, D),
    }


def prepare_tacc_params(p, D):
    """Fold attention scales, pack same-LHS weights, split off the step row, pack the
    eight (1,D) bias/LN vectors into one (8,D) operand, cast matmul weights to bf16."""
    f32, bf16 = jnp.float32, jnp.bfloat16
    wq_s = p["wq"] * (1.0 / math.sqrt(18.0))       # TACC dk is hard-coded to 18 in torch
    saq_s = p["saq"] * (1.0 / math.sqrt(float(D)))  # spatial_attention dk = latent_dim
    wx = jnp.concatenate([p["wk"], p["wv"], saq_s, p["sav"]], axis=1)    # (D,   4D)
    wc = jnp.concatenate([wq_s, p["sak"], p["gw1"], p["bw1"]], axis=1)   # (D+1, 4D)
    vec = jnp.concatenate([p["gb1"], p["glg"], p["glb"], p["gb2"],
                           p["bb1"], p["blg"], p["blb"], p["bb2"]], axis=0)  # (8, D)
    return {
        "wx": wx.astype(bf16),
        "wcm": wc[:D].astype(bf16),
        "wcs": wc[D:D + 1].astype(f32),
        "vec": vec.astype(f32),
        "gw2": p["gw2"].astype(bf16),
        "bw2": p["bw2"].astype(bf16),
    }


# ---------------------------------------------------------------------------
# References:
#   1) "prepared" reference: runs the exact same packed-weight math  -> tight check
#   2) fp32 reference faithful to the PyTorch module                 -> fidelity check
# ---------------------------------------------------------------------------
def _ref_prepared_forward(x, embd, step, prep_list):
    for w in prep_list:
        x = _tacc_block_math(x, embd, step, w["wx"], w["wcm"], w["wcs"],
                             w["vec"], w["gw2"], w["bw2"])
    return x


def _ref_fp32_tacc(x, c, p):
    x = x * jax.lax.rsqrt(jnp.mean(x * x, axis=1, keepdims=True) + 1e-8)
    K = x @ p["wk"]; V = x @ p["wv"]; Q = c @ p["wq"]
    score = jnp.einsum("bsd,btd->bst", K, Q) / math.sqrt(18.0)
    score = jax.nn.softmax(score, axis=-1)
    h = jnp.einsum("bst,btd->bsd", score, V)
    q = x @ p["saq"]; k = c @ p["sak"]; v = x @ p["sav"]
    sc = jnp.einsum("bsa,bsc->bac", k, q) / math.sqrt(float(x.shape[-1]))
    att = jax.nn.softmax(sc, axis=1)
    t_out = _layernorm(jnp.einsum("bsa,bac->bsc", v, att))
    h = _layernorm(h + t_out)
    g = _scaled_leaky_relu(_layernorm(c @ p["gw1"] + p["gb1"]) * p["glg"] + p["glb"])
    gamma = jax.nn.sigmoid(g @ p["gw2"] + p["gb2"])
    b = _scaled_leaky_relu(_layernorm(c @ p["bw1"] + p["bb1"]) * p["blg"] + p["blb"])
    beta = _scaled_leaky_relu(b @ p["bw2"] + p["bb2"])
    return h * (1.0 + gamma) + beta


def _ref_fp32_forward(x, embd, t, params_list, max_period):
    B, S, _ = embd.shape
    step = (t.astype(jnp.float32) / float(max_period)).reshape(-1, 1, 1)
    step = jnp.broadcast_to(step, (B, S, 1))
    c = jnp.concatenate([embd, step], axis=-1)
    for p in params_list:
        x = _ref_fp32_tacc(x, c, p)
    return x


# ---------------------------------------------------------------------------
if __name__ == "__main__":
    B, S, D = 2, 8, 128          # small analogue of (B, 18, 512); D kept lane-aligned
    TIMESTEPS = 1000
    N_BLOCKS = 4

    key = jax.random.PRNGKey(0)
    kx, ke, kt, kp = jax.random.split(key, 4)
    x = jax.random.normal(kx, (B, S, D), jnp.float32)
    embd = jax.random.normal(ke, (B, S, D), jnp.float32)
    t = jax.random.randint(kt, (B,), 0, TIMESTEPS)

    raw_list = [init_tacc_params(k, D) for k in jax.random.split(kp, N_BLOCKS)]
    prep_list = [prepare_tacc_params(p, D) for p in raw_list]

    out = jax.block_until_ready(code_diffuser_forward(x, embd, t, prep_list, TIMESTEPS))
    assert out.shape == (B, S, D)
    assert bool(jnp.all(jnp.isfinite(out)))

    # Tight check: pure-JAX reference running the *same* prepared-weight math.
    step = (t.astype(jnp.float32) / float(TIMESTEPS)).reshape(B, 1, 1)
    ref_p = jax.block_until_ready(_ref_prepared_forward(x, embd, step, prep_list))
    max_abs = float(jnp.max(jnp.abs(out - ref_p)))
    assert bool(jnp.allclose(out, ref_p, atol=3e-2, rtol=3e-2)), \
        f"mismatch vs prepared-weight reference (max abs diff {max_abs:.3e})"

    # Fidelity check: a single block vs fp32 math faithful to the PyTorch module
    # (difference dominated by bf16 weights / bf16 MXU feeds).
    out1 = jax.block_until_ready(code_diffuser_forward(x, embd, t, prep_list[:1], TIMESTEPS))
    ref1 = _ref_fp32_forward(x, embd, t, raw_list[:1], TIMESTEPS)
    rel1 = float(jnp.linalg.norm(out1 - ref1) / (jnp.linalg.norm(ref1) + 1e-12))
    assert rel1 < 0.08, f"single-block relative error vs fp32 reference too large: {rel1:.3e}"

    print("KERNEL_OK")
</pallas_src>

<mosaic_0001>
module attributes {stable_mosaic.version = 11 : i64} {
  func.func @tacc_fused_kernel(%arg0: i32, %arg1: i32, %arg2: memref<1x8x128xf32, #tpu.memory_space<vmem>>, %arg3: memref<1x8x128xf32, #tpu.memory_space<vmem>>, %arg4: memref<1x1x1xf32, #tpu.memory_space<vmem>>, %arg5: memref<1x128x512xbf16, #tpu.memory_space<vmem>>, %arg6: memref<1x128x512xbf16, #tpu.memory_space<vmem>>, %arg7: memref<1x1x512xf32, #tpu.memory_space<vmem>>, %arg8: memref<1x8x128xf32, #tpu.memory_space<vmem>>, %arg9: memref<1x128x128xbf16, #tpu.memory_space<vmem>>, %arg10: memref<1x128x128xbf16, #tpu.memory_space<vmem>>, %arg11: memref<1x8x128xf32, #tpu.memory_space<vmem>>, %arg12: memref<1x8x128xf32, #tpu.memory_space<vmem>>) attributes {dimension_semantics = [#tpu.dimension_semantics<parallel>, #tpu.dimension_semantics<arbitrary>], iteration_bounds = array<i64: 2, 4>, scalar_prefetch = 0 : i64, scratch_operands = 1 : i64, tpu.core_type = #tpu.core_type<tc>, window_params = [{transform_indices = @transform_0, window_bounds = array<i64: 1, 8, 128>}, {transform_indices = @transform_1, window_bounds = array<i64: 1, 8, 128>}, {transform_indices = @transform_2, window_bounds = array<i64: 1, 1, 1>}, {transform_indices = @transform_3, window_bounds = array<i64: 1, 128, 512>}, {transform_indices = @transform_4, window_bounds = array<i64: 1, 128, 512>}, {transform_indices = @transform_5, window_bounds = array<i64: 1, 1, 512>}, {transform_indices = @transform_6, window_bounds = array<i64: 1, 8, 128>}, {transform_indices = @transform_7, window_bounds = array<i64: 1, 128, 128>}, {transform_indices = @transform_8, window_bounds = array<i64: 1, 128, 128>}, {transform_indices = @transform_9, window_bounds = array<i64: 1, 8, 128>}]} {
    %c0_i32 = arith.constant 0 : i32
    %0 = arith.cmpi eq, %arg1, %c0_i32 : i32
    %1 = arith.extui %0 : i1 to i32
    %c0_i32_0 = arith.constant 0 : i32
    %2 = arith.cmpi ne, %1, %c0_i32_0 : i32
    scf.if %2 {
      %c0_80 = arith.constant 0 : index
      %c0_81 = arith.constant 0 : index
      %c0_82 = arith.constant 0 : index
      %229 = vector.load %arg2[%c0_80, %c0_81, %c0_82] : memref<1x8x128xf32, #tpu.memory_space<vmem>>, vector<1x8x128xf32>
      %c0_83 = arith.constant 0 : index
      %c0_84 = arith.constant 0 : index
      %c0_85 = arith.constant 0 : index
      %230 = vector.load %arg12[%c0_83, %c0_84, %c0_85] : memref<1x8x128xf32, #tpu.memory_space<vmem>>, vector<1x8x128xf32>
      tpu.vector_store %arg12[%c0_83, %c0_84, %c0_85], %229 {strides = array<i32>} : memref<1x8x128xf32, #tpu.memory_space<vmem>>, vector<1x8x128xf32>,
    } else {
    }
    %c0 = arith.constant 0 : index
    %c0_1 = arith.constant 0 : index
    %c0_2 = arith.constant 0 : index
    %3 = vector.load %arg12[%c0, %c0_1, %c0_2] : memref<1x8x128xf32, #tpu.memory_space<vmem>>, vector<1x8x128xf32>
    %c0_3 = arith.constant 0 : index
    %c0_4 = arith.constant 0 : index
    %c0_5 = arith.constant 0 : index
    %4 = vector.load %arg3[%c0_3, %c0_4, %c0_5] : memref<1x8x128xf32, #tpu.memory_space<vmem>>, vector<1x8x128xf32>
    %c0_6 = arith.constant 0 : index
    %c0_7 = arith.constant 0 : index
    %c0_8 = arith.constant 0 : index
    %5 = vector.load %arg4[%c0_6, %c0_7, %c0_8] : memref<1x1x1xf32, #tpu.memory_space<vmem>>, vector<1x1x1xf32>
    %c0_9 = arith.constant 0 : index
    %c0_10 = arith.constant 0 : index
    %c0_11 = arith.constant 0 : index
    %6 = vector.load %arg5[%c0_9, %c0_10, %c0_11] : memref<1x128x512xbf16, #tpu.memory_space<vmem>>, vector<1x128x512xbf16>
    %7 = vector.shape_cast %6 : vector<1x128x512xbf16> to vector<128x512xbf16>
    %c0_12 = arith.constant 0 : index
    %c0_13 = arith.constant 0 : index
    %c0_14 = arith.constant 0 : index
    %8 = vector.load %arg6[%c0_12, %c0_13, %c0_14] : memref<1x128x512xbf16, #tpu.memory_space<vmem>>, vector<1x128x512xbf16>
    %9 = vector.shape_cast %8 : vector<1x128x512xbf16> to vector<128x512xbf16>
    %c0_15 = arith.constant 0 : index
    %c0_16 = arith.constant 0 : index
    %c0_17 = arith.constant 0 : index
    %10 = vector.load %arg7[%c0_15, %c0_16, %c0_17] : memref<1x1x512xf32, #tpu.memory_space<vmem>>, vector<1x1x512xf32>
    %11 = vector.shape_cast %10 : vector<1x1x512xf32> to vector<1x512xf32>
    %c0_18 = arith.constant 0 : index
    %c0_19 = arith.constant 0 : index
    %c0_20 = arith.constant 0 : index
    %12 = vector.load %arg8[%c0_18, %c0_19, %c0_20] : memref<1x8x128xf32, #tpu.memory_space<vmem>>, vector<1x8x128xf32>
    %13 = vector.shape_cast %12 : vector<1x8x128xf32> to vector<8x128xf32>
    %c0_21 = arith.constant 0 : index
    %c0_22 = arith.constant 0 : index
    %c0_23 = arith.constant 0 : index
    %14 = vector.load %arg9[%c0_21, %c0_22, %c0_23] : memref<1x128x128xbf16, #tpu.memory_space<vmem>>, vector<1x128x128xbf16>
    %15 = vector.shape_cast %14 : vector<1x128x128xbf16> to vector<128x128xbf16>
    %c0_24 = arith.constant 0 : index
    %c0_25 = arith.constant 0 : index
    %c0_26 = arith.constant 0 : index
    %16 = vector.load %arg10[%c0_24, %c0_25, %c0_26] : memref<1x128x128xbf16, #tpu.memory_space<vmem>>, vector<1x128x128xbf16>
    %17 = vector.shape_cast %16 : vector<1x128x128xbf16> to vector<128x128xbf16>
    %18 = vector.extract_strided_slice %13 {offsets = [0, 0], sizes = [1, 128], strides = [1, 1]} : vector<8x128xf32> to vector<1x128xf32>
    %19 = vector.extract_strided_slice %13 {offsets = [1, 0], sizes = [1, 128], strides = [1, 1]} : vector<8x128xf32> to vector<1x128xf32>
    %20 = vector.extract_strided_slice %13 {offsets = [2, 0], sizes = [1, 128], strides = [1, 1]} : vector<8x128xf32> to vector<1x128xf32>
    %21 = vector.extract_strided_slice %13 {offsets = [3, 0], sizes = [1, 128], strides = [1, 1]} : vector<8x128xf32> to vector<1x128xf32>
    %22 = vector.extract_strided_slice %13 {offsets = [4, 0], sizes = [1, 128], strides = [1, 1]} : vector<8x128xf32> to vector<1x128xf32>
    %23 = vector.extract_strided_slice %13 {offsets = [5, 0], sizes = [1, 128], strides = [1, 1]} : vector<8x128xf32> to vector<1x128xf32>
    %24 = vector.extract_strided_slice %13 {offsets = [6, 0], sizes = [1, 128], strides = [1, 1]} : vector<8x128xf32> to vector<1x128xf32>
    %25 = vector.extract_strided_slice %13 {offsets = [7, 0], sizes = [1, 128], strides = [1, 1]} : vector<8x128xf32> to vector<1x128xf32>
    %26 = arith.mulf %3, %3 : vector<1x8x128xf32>
    %cst = arith.constant dense<0.000000e+00> : vector<1x128xf32>
    %27 = vector.multi_reduction <add>, %26, %cst [1] : vector<1x8x128xf32> to vector<1x128xf32>
    %28 = vector.shape_cast %27 : vector<1x128xf32> to vector<1x1x128xf32>
    %cst_27 = arith.constant 8.000000e+00 : f32
    %29 = vector.broadcast %cst_27 : f32 to vector<1x1x128xf32>
    %30 = arith.divf %28, %29 : vector<1x1x128xf32>
    %cst_28 = arith.constant 9.99999993E-9 : f32
    %31 = vector.broadcast %cst_28 : f32 to vector<1x1x128xf32>
    %32 = arith.addf %30, %31 : vector<1x1x128xf32>
    %33 = math.rsqrt %32 : vector<1x1x128xf32>
    %34 = vector.broadcast %33 : vector<1x1x128xf32> to vector<1x8x128xf32>
    %35 = arith.mulf %3, %34 : vector<1x8x128xf32>
    %36 = arith.truncf %35 : vector<1x8x128xf32> to vector<1x8x128xbf16>
    %37 = vector.shape_cast %36 : vector<1x8x128xbf16> to vector<8x128xbf16>
    %38 = arith.truncf %4 : vector<1x8x128xf32> to vector<1x8x128xbf16>
    %39 = vector.shape_cast %38 : vector<1x8x128xbf16> to vector<8x128xbf16>
    %cst_29 = arith.constant dense<0.000000e+00> : vector<8x512xf32>
    %40 = tpu.matmul %37, %7, %cst_29 {dimension_numbers = #tpu.dot_dimension_numbers<[1], [0], [0], [1], [0, 0, 1, 1], [], []>} : vector<8x128xbf16>, vector<128x512xbf16>, vector<8x512xf32> -> vector<8x512xf32>
    %41 = vector.shape_cast %40 : vector<8x512xf32> to vector<1x8x512xf32>
    %cst_30 = arith.constant dense<0.000000e+00> : vector<8x512xf32>
    %42 = tpu.matmul %39, %9, %cst_30 {dimension_numbers = #tpu.dot_dimension_numbers<[1], [0], [0], [1], [0, 0, 1, 1], [], []>} : vector<8x128xbf16>, vector<128x512xbf16>, vector<8x512xf32> -> vector<8x512xf32>
    %43 = vector.shape_cast %42 : vector<8x512xf32> to vector<1x8x512xf32>
    %44 = vector.shape_cast %11 : vector<1x512xf32> to vector<1x1x512xf32>
    %45 = vector.broadcast %5 : vector<1x1x1xf32> to vector<1x1x512xf32>
    %46 = arith.mulf %45, %44 : vector<1x1x512xf32>
    %47 = vector.broadcast %46 : vector<1x1x512xf32> to vector<1x8x512xf32>
    %48 = arith.addf %43, %47 : vector<1x8x512xf32>
    %49 = vector.extract_strided_slice %41 {offsets = [0, 0, 0], sizes = [1, 8, 128], strides = [1, 1, 1]} : vector<1x8x512xf32> to vector<1x8x128xf32>
    %50 = vector.extract_strided_slice %41 {offsets = [0, 0, 128], sizes = [1, 8, 128], strides = [1, 1, 1]} : vector<1x8x512xf32> to vector<1x8x128xf32>
    %51 = vector.extract_strided_slice %41 {offsets = [0, 0, 256], sizes = [1, 8, 128], strides = [1, 1, 1]} : vector<1x8x512xf32> to vector<1x8x128xf32>
    %52 = vector.extract_strided_slice %41 {offsets = [0, 0, 384], sizes = [1, 8, 128], strides = [1, 1, 1]} : vector<1x8x512xf32> to vector<1x8x128xf32>
    %53 = vector.extract_strided_slice %48 {offsets = [0, 0, 0], sizes = [1, 8, 128], strides = [1, 1, 1]} : vector<1x8x512xf32> to vector<1x8x128xf32>
    %54 = vector.extract_strided_slice %48 {offsets = [0, 0, 128], sizes = [1, 8, 128], strides = [1, 1, 1]} : vector<1x8x512xf32> to vector<1x8x128xf32>
    %55 = vector.extract_strided_slice %48 {offsets = [0, 0, 256], sizes = [1, 8, 128], strides = [1, 1, 1]} : vector<1x8x512xf32> to vector<1x8x128xf32>
    %56 = vector.shape_cast %18 : vector<1x128xf32> to vector<1x1x128xf32>
    %57 = vector.broadcast %56 : vector<1x1x128xf32> to vector<1x8x128xf32>
    %58 = arith.addf %55, %57 : vector<1x8x128xf32>
    %59 = vector.extract_strided_slice %48 {offsets = [0, 0, 384], sizes = [1, 8, 128], strides = [1, 1, 1]} : vector<1x8x512xf32> to vector<1x8x128xf32>
    %60 = vector.shape_cast %22 : vector<1x128xf32> to vector<1x1x128xf32>
    %61 = vector.broadcast %60 : vector<1x1x128xf32> to vector<1x8x128xf32>
    %62 = arith.addf %59, %61 : vector<1x8x128xf32>
    %63 = arith.truncf %49 : vector<1x8x128xf32> to vector<1x8x128xbf16>
    %64 = arith.truncf %53 : vector<1x8x128xf32> to vector<1x8x128xbf16>
    "tpu.trace_start"() <{level = 10 : i32, message = "bsd,btd->bst"}> : () -> ()
    %cst_31 = arith.constant dense<0.000000e+00> : vector<1x8x8xf32>
    %65 = tpu.matmul %63, %64, %cst_31 {dimension_numbers = #tpu.dot_dimension_numbers<[2], [2], [1], [1], [0, 0, 0, 1, 1, 1], [0], [0]>} : vector<1x8x128xbf16>, vector<1x8x128xbf16>, vector<1x8x8xf32> -> vector<1x8x8xf32>
    "tpu.trace_stop"() : () -> ()
    %cst_32 = arith.constant dense<0xFF800000> : vector<1x8xf32>
    %66 = vector.multi_reduction <maximumf>, %65, %cst_32 [2] : vector<1x8x8xf32> to vector<1x8xf32>
    %67 = vector.shape_cast %66 : vector<1x8xf32> to vector<1x8x1xf32>
    %68 = vector.broadcast %67 : vector<1x8x1xf32> to vector<1x8x8xf32>
    %69 = arith.subf %65, %68 : vector<1x8x8xf32>
    %70 = math.exp %69 : vector<1x8x8xf32>
    %71 = arith.truncf %70 : vector<1x8x8xf32> to vector<1x8x8xbf16>
    %72 = arith.truncf %50 : vector<1x8x128xf32> to vector<1x8x128xbf16>
    "tpu.trace_start"() <{level = 10 : i32, message = "bst,btd->bsd"}> : () -> ()
    %cst_33 = arith.constant dense<0.000000e+00> : vector<1x8x128xf32>
    %73 = tpu.matmul %71, %72, %cst_33 {dimension_numbers = #tpu.dot_dimension_numbers<[2], [1], [1], [2], [0, 0, 0, 1, 1, 2], [0], [0]>} : vector<1x8x8xbf16>, vector<1x8x128xbf16>, vector<1x8x128xf32> -> vector<1x8x128xf32>
    "tpu.trace_stop"() : () -> ()
    %cst_34 = arith.constant dense<0.000000e+00> : vector<1x8xf32>
    %74 = vector.multi_reduction <add>, %70, %cst_34 [2] : vector<1x8x8xf32> to vector<1x8xf32>
    %75 = vector.shape_cast %74 : vector<1x8xf32> to vector<1x8x1xf32>
    %cst_35 = arith.constant 1.000000e+00 : f32
    %76 = vector.broadcast %cst_35 : f32 to vector<1x8x1xf32>
    %77 = arith.divf %76, %75 : vector<1x8x1xf32>
    %78 = vector.broadcast %77 : vector<1x8x1xf32> to vector<1x8x128xf32>
    %79 = arith.mulf %73, %78 : vector<1x8x128xf32>
    %80 = arith.truncf %51 : vector<1x8x128xf32> to vector<1x8x128xbf16>
    %81 = tpu.transpose %80, [0, 2, 1] : vector<1x8x128xbf16> -> vector<1x128x8xbf16>
    %82 = arith.truncf %54 : vector<1x8x128xf32> to vector<1x8x128xbf16>
    "tpu.trace_start"() <{level = 10 : i32, message = "bcs,bsa->bca"}> : () -> ()
    %cst_36 = arith.constant dense<0.000000e+00> : vector<1x128x128xf32>
    %83 = tpu.matmul %81, %82, %cst_36 {dimension_numbers = #tpu.dot_dimension_numbers<[2], [1], [1], [2], [0, 0, 0, 1, 1, 2], [0], [0]>} : vector<1x128x8xbf16>, vector<1x8x128xbf16>, vector<1x128x128xf32> -> vector<1x128x128xf32>
    "tpu.trace_stop"() : () -> ()
    %cst_37 = arith.constant dense<0xFF800000> : vector<1x128xf32>
    %84 = vector.multi_reduction <maximumf>, %83, %cst_37 [2] : vector<1x128x128xf32> to vector<1x128xf32>
    %85 = vector.shape_cast %84 : vector<1x128xf32> to vector<1x128x1xf32>
    %86 = vector.broadcast %85 : vector<1x128x1xf32> to vector<1x128x128xf32>
    %87 = arith.subf %83, %86 : vector<1x128x128xf32>
    %88 = math.exp %87 : vector<1x128x128xf32>
    %89 = arith.truncf %52 : vector<1x8x128xf32> to vector<1x8x128xbf16>
    %90 = arith.truncf %88 : vector<1x128x128xf32> to vector<1x128x128xbf16>
    "tpu.trace_start"() <{level = 10 : i32, message = "bsa,bca->bsc"}> : () -> ()
    %cst_38 = arith.constant dense<0.000000e+00> : vector<1x8x128xf32>
    %91 = tpu.matmul %89, %90, %cst_38 {dimension_numbers = #tpu.dot_dimension_numbers<[2], [2], [1], [1], [0, 0, 0, 1, 1, 1], [0], [0]>} : vector<1x8x128xbf16>, vector<1x128x128xbf16>, vector<1x8x128xf32> -> vector<1x8x128xf32>
    "tpu.trace_stop"() : () -> ()
    %cst_39 = arith.constant dense<0.000000e+00> : vector<1x128xf32>
    %92 = vector.multi_reduction <add>, %88, %cst_39 [2] : vector<1x128x128xf32> to vector<1x128xf32>
    %cst_40 = arith.constant 1.000000e+00 : f32
    %93 = vector.broadcast %cst_40 : f32 to vector<1x128xf32>
    %94 = arith.divf %93, %92 : vector<1x128xf32>
    %95 = vector.shape_cast %94 : vector<1x128xf32> to vector<1x1x128xf32>
    %96 = vector.broadcast %95 : vector<1x1x128xf32> to vector<1x8x128xf32>
    %97 = arith.mulf %91, %96 : vector<1x8x128xf32>
    %cst_41 = arith.constant dense<0.000000e+00> : vector<1x8xf32>
    %98 = vector.multi_reduction <add>, %97, %cst_41 [2] : vector<1x8x128xf32> to vector<1x8xf32>
    %99 = vector.shape_cast %98 : vector<1x8xf32> to vector<1x8x1xf32>
    %cst_42 = arith.constant 1.280000e+02 : f32
    %100 = vector.broadcast %cst_42 : f32 to vector<1x8x1xf32>
    %101 = arith.divf %99, %100 : vector<1x8x1xf32>
    %102 = vector.broadcast %101 : vector<1x8x1xf32> to vector<1x8x128xf32>
    %103 = arith.subf %97, %102 : vector<1x8x128xf32>
    %104 = arith.mulf %103, %103 : vector<1x8x128xf32>
    %cst_43 = arith.constant dense<0.000000e+00> : vector<1x8xf32>
    %105 = vector.multi_reduction <add>, %104, %cst_43 [2] : vector<1x8x128xf32> to vector<1x8xf32>
    %106 = vector.shape_cast %105 : vector<1x8xf32> to vector<1x8x1xf32>
    %cst_44 = arith.constant 1.280000e+02 : f32
    %107 = vector.broadcast %cst_44 : f32 to vector<1x8x1xf32>
    %108 = arith.divf %106, %107 : vector<1x8x1xf32>
    %109 = vector.broadcast %101 : vector<1x8x1xf32> to vector<1x8x128xf32>
    %110 = arith.subf %97, %109 : vector<1x8x128xf32>
    %cst_45 = arith.constant 9.99999974E-6 : f32
    %111 = vector.broadcast %cst_45 : f32 to vector<1x8x1xf32>
    %112 = arith.addf %108, %111 : vector<1x8x1xf32>
    %113 = math.rsqrt %112 : vector<1x8x1xf32>
    %114 = vector.broadcast %113 : vector<1x8x1xf32> to vector<1x8x128xf32>
    %115 = arith.mulf %110, %114 : vector<1x8x128xf32>
    %116 = arith.addf %79, %115 : vector<1x8x128xf32>
    %cst_46 = arith.constant dense<0.000000e+00> : vector<1x8xf32>
    %117 = vector.multi_reduction <add>, %116, %cst_46 [2] : vector<1x8x128xf32> to vector<1x8xf32>
    %118 = vector.shape_cast %117 : vector<1x8xf32> to vector<1x8x1xf32>
    %cst_47 = arith.constant 1.280000e+02 : f32
    %119 = vector.broadcast %cst_47 : f32 to vector<1x8x1xf32>
    %120 = arith.divf %118, %119 : vector<1x8x1xf32>
    %121 = vector.broadcast %120 : vector<1x8x1xf32> to vector<1x8x128xf32>
    %122 = arith.subf %116, %121 : vector<1x8x128xf32>
    %123 = arith.mulf %122, %122 : vector<1x8x128xf32>
    %cst_48 = arith.constant dense<0.000000e+00> : vector<1x8xf32>
    %124 = vector.multi_reduction <add>, %123, %cst_48 [2] : vector<1x8x128xf32> to vector<1x8xf32>
    %125 = vector.shape_cast %124 : vector<1x8xf32> to vector<1x8x1xf32>
    %cst_49 = arith.constant 1.280000e+02 : f32
    %126 = vector.broadcast %cst_49 : f32 to vector<1x8x1xf32>
    %127 = arith.divf %125, %126 : vector<1x8x1xf32>
    %128 = vector.broadcast %120 : vector<1x8x1xf32> to vector<1x8x128xf32>
    %129 = arith.subf %116, %128 : vector<1x8x128xf32>
    %cst_50 = arith.constant 9.99999974E-6 : f32
    %130 = vector.broadcast %cst_50 : f32 to vector<1x8x1xf32>
    %131 = arith.addf %127, %130 : vector<1x8x1xf32>
    %132 = math.rsqrt %131 : vector<1x8x1xf32>
    %133 = vector.broadcast %132 : vector<1x8x1xf32> to vector<1x8x128xf32>
    %134 = arith.mulf %129, %133 : vector<1x8x128xf32>
    %cst_51 = arith.constant dense<0.000000e+00> : vector<1x8xf32>
    %135 = vector.multi_reduction <add>, %58, %cst_51 [2] : vector<1x8x128xf32> to vector<1x8xf32>
    %136 = vector.shape_cast %135 : vector<1x8xf32> to vector<1x8x1xf32>
    %cst_52 = arith.constant 1.280000e+02 : f32
    %137 = vector.broadcast %cst_52 : f32 to vector<1x8x1xf32>
    %138 = arith.divf %136, %137 : vector<1x8x1xf32>
    %139 = vector.broadcast %138 : vector<1x8x1xf32> to vector<1x8x128xf32>
    %140 = arith.subf %58, %139 : vector<1x8x128xf32>
    %141 = arith.mulf %140, %140 : vector<1x8x128xf32>
    %cst_53 = arith.constant dense<0.000000e+00> : vector<1x8xf32>
    %142 = vector.multi_reduction <add>, %141, %cst_53 [2] : vector<1x8x128xf32> to vector<1x8xf32>
    %143 = vector.shape_cast %142 : vector<1x8xf32> to vector<1x8x1xf32>
    %cst_54 = arith.constant 1.280000e+02 : f32
    %144 = vector.broadcast %cst_54 : f32 to vector<1x8x1xf32>
    %145 = arith.divf %143, %144 : vector<1x8x1xf32>
    %146 = vector.broadcast %138 : vector<1x8x1xf32> to vector<1x8x128xf32>
    %147 = arith.subf %58, %146 : vector<1x8x128xf32>
    %cst_55 = arith.constant 9.99999974E-6 : f32
    %148 = vector.broadcast %cst_55 : f32 to vector<1x8x1xf32>
    %149 = arith.addf %145, %148 : vector<1x8x1xf32>
    %150 = math.rsqrt %149 : vector<1x8x1xf32>
    %151 = vector.broadcast %150 : vector<1x8x1xf32> to vector<1x8x128xf32>
    %152 = arith.mulf %147, %151 : vector<1x8x128xf32>
    %153 = vector.shape_cast %19 : vector<1x128xf32> to vector<1x1x128xf32>
    %154 = vector.broadcast %153 : vector<1x1x128xf32> to vector<1x8x128xf32>
    %155 = arith.mulf %152, %154 : vector<1x8x128xf32>
    %156 = vector.shape_cast %20 : vector<1x128xf32> to vector<1x1x128xf32>
    %157 = vector.broadcast %156 : vector<1x1x128xf32> to vector<1x8x128xf32>
    %158 = arith.addf %155, %157 : vector<1x8x128xf32>
    %cst_56 = arith.constant 0.000000e+00 : f32
    %159 = vector.broadcast %cst_56 : f32 to vector<1x8x128xf32>
    %160 = arith.cmpf oge, %158, %159 : vector<1x8x128xf32>
    %cst_57 = arith.constant 2.000000e-01 : f32
    %161 = vector.broadcast %cst_57 : f32 to vector<1x8x128xf32>
    %162 = arith.mulf %158, %161 : vector<1x8x128xf32>
    %163 = arith.select %160, %158, %162 : vector<1x8x128xi1>, vector<1x8x128xf32>
    %cst_58 = arith.constant 1.41421354 : f32
    %164 = vector.broadcast %cst_58 : f32 to vector<1x8x128xf32>
    %165 = arith.mulf %163, %164 : vector<1x8x128xf32>
    %166 = arith.truncf %165 : vector<1x8x128xf32> to vector<1x8x128xbf16>
    %167 = vector.shape_cast %166 : vector<1x8x128xbf16> to vector<8x128xbf16>
    %cst_59 = arith.constant dense<0.000000e+00> : vector<8x128xf32>
    %168 = tpu.matmul %167, %15, %cst_59 {dimension_numbers = #tpu.dot_dimension_numbers<[1], [0], [0], [1], [0, 0, 1, 1], [], []>} : vector<8x128xbf16>, vector<128x128xbf16>, vector<8x128xf32> -> vector<8x128xf32>
    %169 = vector.shape_cast %168 : vector<8x128xf32> to vector<1x8x128xf32>
    %170 = vector.shape_cast %21 : vector<1x128xf32> to vector<1x1x128xf32>
    %171 = vector.broadcast %170 : vector<1x1x128xf32> to vector<1x8x128xf32>
    %172 = arith.addf %169, %171 : vector<1x8x128xf32>
    %173 = arith.negf %172 : vector<1x8x128xf32>
    %174 = math.exp %173 : vector<1x8x128xf32>
    %cst_60 = arith.constant 1.000000e+00 : f32
    %175 = vector.broadcast %cst_60 : f32 to vector<1x8x128xf32>
    %176 = arith.addf %175, %174 : vector<1x8x128xf32>
    %177 = arith.divf %175, %176 : vector<1x8x128xf32>
    %cst_61 = arith.constant dense<0.000000e+00> : vector<1x8xf32>
    %178 = vector.multi_reduction <add>, %62, %cst_61 [2] : vector<1x8x128xf32> to vector<1x8xf32>
    %179 = vector.shape_cast %178 : vector<1x8xf32> to vector<1x8x1xf32>
    %cst_62 = arith.constant 1.280000e+02 : f32
    %180 = vector.broadcast %cst_62 : f32 to vector<1x8x1xf32>
    %181 = arith.divf %179, %180 : vector<1x8x1xf32>
    %182 = vector.broadcast %181 : vector<1x8x1xf32> to vector<1x8x128xf32>
    %183 = arith.subf %62, %182 : vector<1x8x128xf32>
    %184 = arith.mulf %183, %183 : vector<1x8x128xf32>
    %cst_63 = arith.constant dense<0.000000e+00> : vector<1x8xf32>
    %185 = vector.multi_reduction <add>, %184, %cst_63 [2] : vector<1x8x128xf32> to vector<1x8xf32>
    %186 = vector.shape_cast %185 : vector<1x8xf32> to vector<1x8x1xf32>
    %cst_64 = arith.constant 1.280000e+02 : f32
    %187 = vector.broadcast %cst_64 : f32 to vector<1x8x1xf32>
    %188 = arith.divf %186, %187 : vector<1x8x1xf32>
    %189 = vector.broadcast %181 : vector<1x8x1xf32> to vector<1x8x128xf32>
    %190 = arith.subf %62, %189 : vector<1x8x128xf32>
    %cst_65 = arith.constant 9.99999974E-6 : f32
    %191 = vector.broadcast %cst_65 : f32 to vector<1x8x1xf32>
    %192 = arith.addf %188, %191 : vector<1x8x1xf32>
    %193 = math.rsqrt %192 : vector<1x8x1xf32>
    %194 = vector.broadcast %193 : vector<1x8x1xf32> to vector<1x8x128xf32>
    %195 = arith.mulf %190, %194 : vector<1x8x128xf32>
    %196 = vector.shape_cast %23 : vector<1x128xf32> to vector<1x1x128xf32>
    %197 = vector.broadcast %196 : vector<1x1x128xf32> to vector<1x8x128xf32>
    %198 = arith.mulf %195, %197 : vector<1x8x128xf32>
    %199 = vector.shape_cast %24 : vector<1x128xf32> to vector<1x1x128xf32>
    %200 = vector.broadcast %199 : vector<1x1x128xf32> to vector<1x8x128xf32>
    %201 = arith.addf %198, %200 : vector<1x8x128xf32>
    %cst_66 = arith.constant 0.000000e+00 : f32
    %202 = vector.broadcast %cst_66 : f32 to vector<1x8x128xf32>
    %203 = arith.cmpf oge, %201, %202 : vector<1x8x128xf32>
    %cst_67 = arith.constant 2.000000e-01 : f32
    %204 = vector.broadcast %cst_67 : f32 to vector<1x8x128xf32>
    %205 = arith.mulf %201, %204 : vector<1x8x128xf32>
    %206 = arith.select %203, %201, %205 : vector<1x8x128xi1>, vector<1x8x128xf32>
    %cst_68 = arith.constant 1.41421354 : f32
    %207 = vector.broadcast %cst_68 : f32 to vector<1x8x128xf32>
    %208 = arith.mulf %206, %207 : vector<1x8x128xf32>
    %209 = arith.truncf %208 : vector<1x8x128xf32> to vector<1x8x128xbf16>
    %210 = vector.shape_cast %209 : vector<1x8x128xbf16> to vector<8x128xbf16>
    %cst_69 = arith.constant dense<0.000000e+00> : vector<8x128xf32>
    %211 = tpu.matmul %210, %17, %cst_69 {dimension_numbers = #tpu.dot_dimension_numbers<[1], [0], [0], [1], [0, 0, 1, 1], [], []>} : vector<8x128xbf16>, vector<128x128xbf16>, vector<8x128xf32> -> vector<8x128xf32>
    %212 = vector.shape_cast %211 : vector<8x128xf32> to vector<1x8x128xf32>
    %213 = vector.shape_cast %25 : vector<1x128xf32> to vector<1x1x128xf32>
    %214 = vector.broadcast %213 : vector<1x1x128xf32> to vector<1x8x128xf32>
    %215 = arith.addf %212, %214 : vector<1x8x128xf32>
    %cst_70 = arith.constant 0.000000e+00 : f32
    %216 = vector.broadcast %cst_70 : f32 to vector<1x8x128xf32>
    %217 = arith.cmpf oge, %215, %216 : vector<1x8x128xf32>
    %cst_71 = arith.constant 2.000000e-01 : f32
    %218 = vector.broadcast %cst_71 : f32 to vector<1x8x128xf32>
    %219 = arith.mulf %215, %218 : vector<1x8x128xf32>
    %220 = arith.select %217, %215, %219 : vector<1x8x128xi1>, vector<1x8x128xf32>
    %cst_72 = arith.constant 1.41421354 : f32
    %221 = vector.broadcast %cst_72 : f32 to vector<1x8x128xf32>
    %222 = arith.mulf %220, %221 : vector<1x8x128xf32>
    %cst_73 = arith.constant 1.000000e+00 : f32
    %223 = vector.broadcast %cst_73 : f32 to vector<1x8x128xf32>
    %224 = arith.addf %223, %177 : vector<1x8x128xf32>
    %225 = arith.mulf %134, %224 : vector<1x8x128xf32>
    %226 = arith.addf %225, %222 : vector<1x8x128xf32>
    %c0_74 = arith.constant 0 : index
    %c0_75 = arith.constant 0 : index
    %c0_76 = arith.constant 0 : index
    %227 = vector.load %arg12[%c0_74, %c0_75, %c0_76] : memref<1x8x128xf32, #tpu.memory_space<vmem>>, vector<1x8x128xf32>
    tpu.vector_store %arg12[%c0_74, %c0_75, %c0_76], %226 {strides = array<i32>} : memref<1x8x128xf32, #tpu.memory_space<vmem>>, vector<1x8x128xf32>,
    %c0_77 = arith.constant 0 : index
    %c0_78 = arith.constant 0 : index
    %c0_79 = arith.constant 0 : index
    %228 = vector.load %arg11[%c0_77, %c0_78, %c0_79] : memref<1x8x128xf32, #tpu.memory_space<vmem>>, vector<1x8x128xf32>
    tpu.vector_store %arg11[%c0_77, %c0_78, %c0_79], %226 {strides = array<i32>} : memref<1x8x128xf32, #tpu.memory_space<vmem>>, vector<1x8x128xf32>,
    return
  }
  func.func @transform_0(%arg0: i32, %arg1: i32) -> (i32, i32, i32) {
    %c0_i32 = arith.constant 0 : i32
    %c0_i32_0 = arith.constant 0 : i32
    %c0_i32_1 = arith.constant 0 : i32
    return %arg0, %c0_i32, %c0_i32_0 : i32, i32, i32
  }
  func.func @transform_1(%arg0: i32, %arg1: i32) -> (i32, i32, i32) {
    %c0_i32 = arith.constant 0 : i32
    %c0_i32_0 = arith.constant 0 : i32
    %c0_i32_1 = arith.constant 0 : i32
    return %arg0, %c0_i32, %c0_i32_0 : i32, i32, i32
  }
  func.func @transform_2(%arg0: i32, %arg1: i32) -> (i32, i32, i32) {
    %c0_i32 = arith.constant 0 : i32
    %c0_i32_0 = arith.constant 0 : i32
    %c0_i32_1 = arith.constant 0 : i32
    return %arg0, %c0_i32, %c0_i32_0 : i32, i32, i32
  }
  func.func @transform_3(%arg0: i32, %arg1: i32) -> (i32, i32, i32) {
    %c0_i32 = arith.constant 0 : i32
    %c0_i32_0 = arith.constant 0 : i32
    %c0_i32_1 = arith.constant 0 : i32
    return %arg1, %c0_i32, %c0_i32_0 : i32, i32, i32
  }
  func.func @transform_4(%arg0: i32, %arg1: i32) -> (i32, i32, i32) {
    %c0_i32 = arith.constant 0 : i32
    %c0_i32_0 = arith.constant 0 : i32
    %c0_i32_1 = arith.constant 0 : i32
    return %arg1, %c0_i32, %c0_i32_0 : i32, i32, i32
  }
  func.func @transform_5(%arg0: i32, %arg1: i32) -> (i32, i32, i32) {
    %c0_i32 = arith.constant 0 : i32
    %c0_i32_0 = arith.constant 0 : i32
    %c0_i32_1 = arith.constant 0 : i32
    return %arg1, %c0_i32, %c0_i32_0 : i32, i32, i32
  }
  func.func @transform_6(%arg0: i32, %arg1: i32) -> (i32, i32, i32) {
    %c0_i32 = arith.constant 0 : i32
    %c0_i32_0 = arith.constant 0 : i32
    %c0_i32_1 = arith.constant 0 : i32
    return %arg1, %c0_i32, %c0_i32_0 : i32, i32, i32
  }
  func.func @transform_7(%arg0: i32, %arg1: i32) -> (i32, i32, i32) {
    %c0_i32 = arith.constant 0 : i32
    %c0_i32_0 = arith.constant 0 : i32
    %c0_i32_1 = arith.constant 0 : i32
    return %arg1, %c0_i32, %c0_i32_0 : i32, i32, i32
  }
  func.func @transform_8(%arg0: i32, %arg1: i32) -> (i32, i32, i32) {
    %c0_i32 = arith.constant 0 : i32
    %c0_i32_0 = arith.constant 0 : i32
    %c0_i32_1 = arith.constant 0 : i32
    return %arg1, %c0_i32, %c0_i32_0 : i32, i32, i32
  }
  func.func @transform_9(%arg0: i32, %arg1: i32) -> (i32, i32, i32) {
    %c0_i32 = arith.constant 0 : i32
    %c0_i32_0 = arith.constant 0 : i32
    %c0_i32_1 = arith.constant 0 : i32
    return %arg0, %c0_i32, %c0_i32_0 : i32, i32, i32
  }
}

</mosaic_0001>

<bundles_post_ra>
// kernel: tpu_custom_call.1
= control target key start
LH: loop header
LB: loop body
LE: loop exit
PB: predicated region body
PF: predicated region fallthrough
CT: control target
= control target key end

     0   :  { %s4202_s0 = inlined_call_operand.hbm [shape: f32[2,8,128], index: 0, kind: input, shape index: {}]   ;;  %s4203_s1 = inlined_call_operand.hbm [shape: f32[2,8,128], index: 1, kind: input, shape index: {}]   ;;  %s4204_s2 = inlined_call_operand.vmem [shape: f32[2,1,1], index: 2, kind: input, shape index: {}]   ;;  %s4205_s3 = inlined_call_operand.hbm [shape: bf16[4,128,512], index: 3, kind: input, shape index: {}]   ;;  %s4206_s4 = inlined_call_operand.hbm [shape: bf16[4,128,512], index: 4, kind: input, shape index: {}]   ;;  %s4207_s5 = inlined_call_operand.vmem [shape: f32[4,1,512], index: 5, kind: input, shape index: {}]   ;;  %s4208_s6 = inlined_call_operand.hbm [shape: f32[4,8,128], index: 6, kind: input, shape index: {}]   ;;  %s4209_s7 = inlined_call_operand.hbm [shape: bf16[4,128,128], index: 7, kind: input, shape index: {}]   ;;  %s4210_s8 = inlined_call_operand.hbm [shape: bf16[4,128,128], index: 8, kind: input, shape index: {}]   ;;  %s4211_s9 = inlined_call_operand.hbm [shape: f32[2,8,128], index: 9, kind: output, shape index: {}]  }
   0x1   :  { %4251 = sst [smem:[#allocation39_spill]] %s4203_s1 }
   0x2   :  { %4252 = sst [smem:[#allocation40_spill]] %s4204_s2 }
   0x3   :  { %4253 = sst [smem:[#allocation41_spill]] %s4206_s4 }
   0x4   :  { %4254 = sst [smem:[#allocation42_spill]] %s4207_s5 }
   0x5   :  { %4255 = sst [smem:[#allocation43_spill]] %s4209_s7 }
   0x6   :  { %4256 = sst [smem:[#allocation44_spill]] %s4211_s9 }
   0x7   :  { %14 = vsyncpa [#allocation4], 0 }
   0x8   :  { %16 = vsyncpa [#allocation4 + $0x1], 0 }
   0x9   :  { %17 = vsyncpa [#allocation7], 0 }
   0xa   :  { %19 = vsyncpa [#allocation7 + $0x1], 0 }
   0xb   :  { %20 = vsyncpa [#allocation10], 0 }
   0xc   :  { %22 = vsyncpa [#allocation10 + $0x1], 0 }
   0xd   :  { %23 = vsyncpa [#allocation13], 0 }
   0xe   :  { %25 = vsyncpa [#allocation13 + $0x1], 0 }
   0xf   :  { %26 = vsyncpa [#allocation5], 0 }
  0x10   :  { %28 = vsyncpa [#allocation5 + $0x1], 0  ;;  %s3380_s30 = smov 0   ;;  %s3382_s10 = smov 0  }
  0x11   :  { %s3384_s11 = smov 0   ;;  %s3386_s12 = smov 0  }
  0x12   :  { %s3388_s13 = smov 0   ;;  %s3390_s14 = smov 0  }
  0x13   :  { %s3392_s15 = smov 0   ;;  %s3394_s16 = smov 0  }
  0x14   :  { %s3396_s17 = smov 0   ;;  %s3398_s18 = smov 0  }
  0x15   :  { %s3400_s19 = smov 0  }
  0x16 LB: > { %4257 = sst [smem:[#allocation22_spill]] %s3277_s10  ;;  %s3436_s20 = sadd.s32 4294967295, %s3313_s19   ;;  %s3313_s19 = sphi %s3400_s19, %s34_s19   ;;  %s3309_s18 = sphi %s3398_s18, %s4338_s18   ;;  %s3305_s17 = sphi %s3396_s17, %s4337_s17   ;;  %s3301_s16 = sphi %s3394_s16, %s4336_s16   ;;  %s3297_s15 = sphi %s3392_s15, %s4335_s15   ;;  %s3293_s14 = sphi %s3390_s14, %s4334_s14   ;;  %s3289_s13 = sphi %s3388_s13, %s4333_s13   ;;  %s3285_s12 = sphi %s3386_s12, %s4329_s12   ;;  %s3281_s11 = sphi %s3384_s11, %s4328_s11   ;;  %s3277_s10 = sphi %s3382_s10, %s4327_s10   ;;  %s3273_s30 = sphi %s3380_s30, %s4326_s30  }
  0x17   : > { %4258 = sst [smem:[#allocation23_spill]] %s3281_s11  ;;  %s2370_s21 = sadd.s32 4294967294, %s3313_s19  }
  0x18   : > { %4259 = sst [smem:[#allocation24_spill]] %s3285_s12  ;;  %s43_s22 = sadd.s32 1, %s3305_s17 }
  0x19   : > { %4260 = sst [smem:[#allocation25_spill]] %s3289_s13  ;;  %s46_s23 = sadd.s32 1, %s3309_s18 }
  0x1a   : > { %4261 = sst [smem:[#allocation26_spill]] %s3297_s15  ;;  %p44_p0 = scmp.ge.s32.totalorder %s43_s22, 4 }
  0x1b   : > { %4262 = sst [smem:[#allocation27_spill]] %s3301_s16  ;;  %s53_s24 = sadd.s32 1, %s3293_s14 }
  0x1c   : > { %4263 = sst [smem:[#allocation28_spill]] %s3313_s19  ;;  %p60_p1 = scmp.ne.s32.totalorder %s3293_s14, %s3289_s13 }
  0x1d   : > { %4264 = sst [smem:[#allocation29_spill]] %s3436_s20  ;;  %p61_p2 = scmp.eq.s32.totalorder %s3313_s19, 0 }
  0x1e   : > { %s4340_s22 = smov (%p44_p0, %s43_s22), 0  ;;  %s4342_s23 = smov (!%p44_p0, %s46_s23), %s3309_s18 }
  0x1f   : > { %4265 = sst [smem:[#allocation30_spill]] %s4340_s22  ;;  %p3453_p3 = por %p61_p2, %p60_p1 }
  0x20   : > { %p4214_p4 = scmp.ne.s32.totalorder %s3289_s13, %s3285_s12  ;;  %p48_p5 = scmp.ge.s32.totalorder %s4342_s23, 2 }
  0x21   : > { %p67_p6 = scmp.eq.s32.totalorder %s3436_s20, 0  ;;  %s128_s26 = ssub.s32 %s3305_s17, %s4340_s22 }
  0x22   : > { %s131_s27 = sadd.s32 1, %s3281_s11  ;;  %s4344_s23 = smov (%p48_p5, %s4342_s23), 0 }
  0x23   : > { %4267 = sst [smem:[#allocation31_spill]] %s4344_s23  ;;  %p3470_p7 = por %p67_p6, %p4214_p4 }
  0x24   : > { %p129_p8 = scmp.eq.s32.totalorder %s128_s26, 0  ;;  %s50_s29 = ssub.s32 %s3309_s18, %s4344_s23 }
  0x25   : > { %s4268_s28 = scalar_select %p3470_p7, 1, 0 }
  0x26   : > { %p138_p9 = scmp.ne.s32.totalorder %s3281_s11, %s3277_s10  ;;  %p51_p10 = scmp.eq.s32.totalorder %s50_s29, 0 }
  0x27   : > { %4269 = sst [smem:[#allocation32_spill]] %s4268_s28  ;;  %p144_p11 = scmp.ne.s32.totalorder %s3277_s10, %s3273_s30 }
  0x28   : > { %s3481_s22 = scalar_select %p129_p8, %s3281_s11, %s131_s27  }
  0x29   : > { %s3484_s9 = scalar_select %p51_p10, %s3293_s14, %s53_s24  }
  0x2a   : > { %4270 = sst [smem:[#allocation33_spill]] %s3481_s22  ;;  %p3488_p12 = por %p138_p9, %p61_p2 }
  0x2b   : > { %4271 = sst [smem:[#allocation34_spill]] %s3484_s9  ;;  %p3494_p13 = por %p144_p11, %p67_p6 }
  0x2c   : > { %p298_p0 = scmp.eq.s32.totalorder %s3436_s20, 7  ;;  %p304_p5 = scmp.eq.s32.totalorder %s2370_s21, 7 }
  0x2d   : > { %s4273_s26 = scalar_select %p3494_p13, 1, 0 }
  0x2e   : > { %p2673_p4 = scmp.lt.s32.totalorder %s3313_s19, 8  ;;  %p3503_p7 = por %p298_p0, %p60_p1 }
  0x2f   : > { %4274 = sst [smem:[#allocation35_spill]] %s4273_s26  ;;  %p4277_p8 = scmp.ne.s32.totalorder %s3289_s13, %s3285_s12 }
  0x30   : > { %s4275_s30 = scalar_select %p3503_p7, 1, 0 }
  0x31   : > { %p3510_p10 = por %p304_p5, %p4277_p8  ;;  %s4219_s27 = sand.u32 1, %s3293_s14  }
  0x32   : > { %4276 = sst [smem:[#allocation36_spill]] %s4275_s30  ;;  %s4223_s29 = sshll.u32 %s3309_s18, 7 }
  0x33   : > { %s4278_s24 = scalar_select %p3510_p10, 1, 0 }
  0x34   : > { %s3518_s23 = sshll.u32 %s4219_s27, 3  ;;  %p3522_p2 = pnand %p2673_p4, %p3453_p3 }
  0x35   : > { %4279 = sst [smem:[#allocation37_spill]] %s4278_s24  ;;  %s3527_s9 = sand.u32 1, %s3313_s19  }
  0x36   : > { %s4280_s21 = scalar_select %p3522_p2, 1, 0 }
  0x37   : > { %s4281_s1 = sld [smem:[#allocation39_spill]]  ;;  %s346_s25 = scalar_lea.vmem [#allocation6], %s3518_s23 }
  0x38   : > { %s353_s27 = sshll.u32 %s346_s25, 4  ;;  %p3541_p1 = pnand %p2673_p4, %p3488_p12  ;;  %s3537_s27 = int_to_ptr.vmem [resolvable:$true] %s353_s27 }
  0x39   : > { %s4227_s2 = scalar_lea.sflag [#allocation7], %s3527_s9  ;;  %p4234_p6 = pneg %p3522_p2 }
  0x3a   : > { %s4282_s30 = scalar_select %p3541_p1, 1, 0 }
  0x3d   : > { %s3534_s24 = scalar_lea.hbm %s4281_s1, %s4223_s29  ;;  %s2970_s25 = scalar_lea.hbm %s4281_s1, 256 }
  0x3e   : > { %s2965_s15 = scalar_lea.hbm %s3534_s24, 128  ;;  %p2971_p4 = scmp.lt.u32.totalorder %s3534_s24, %s4281_s1 }
  0x3f   : > { %p2966_p3 = scmp.ne.s32.totalorder %s3534_s24, %s2965_s15  ;;  %p2972_p12 = scmp.lt.u32.totalorder %s2970_s25, %s2965_s15 }
  0x40   : > { %p2974_p5 = scmp.lt.u32.totalorder %s2965_s15, %s3534_s24 }
  0x41   : > { %p2968_p9 = pnand %p4234_p6, %p2966_p3  ;;  %p2973_p0 = por %p2972_p12, %p2971_p4 }
  0x43   : > { %p2969_p11 = pneg %p2968_p9  ;;  %p2975_p8 = por %p2974_p5, %p2973_p0 }
  0x45   : > { %p2976_p10 = pnand %p2975_p8, %p2969_p11 }
  0x47   : > { %2979 = shalt.err (!%p2976_p10)
}
  0x48   : > { %s2980_s5 = scalar_lea.vmem %s3537_s27, 128  ;;  %s3315_s12 = smov [#allocation6]  }
  0x49   : > { %p2981_p3 = scmp.ne.s32.totalorder %s3537_s27, %s2980_s5  ;;  %s2985_s22 = sshll.u32 %s3315_s12, 4  ;;  %s2986_s22 = int_to_ptr.vmem [resolvable:$false] %s2985_s22 }
  0x4a   : > { %s2987_s16 = scalar_lea.vmem %s2986_s22, 256  ;;  %p2988_p13 = scmp.lt.s32.totalorder %s3537_s27, %s2986_s22 }
  0x4b   : > { %p2983_p9 = pnand %p2981_p3, %p4234_p6  ;;  %p2989_p4 = scmp.lt.s32.totalorder %s2987_s16, %s2980_s5 }
  0x4d   : > { %p2984_p7 = pneg %p2983_p9  ;;  %p2990_p12 = por %p2989_p4, %p2988_p13 }
  0x4f   : > { %p2991_p0 = pnand %p2990_p12, %p2984_p7 }
  0x51   : > { %2994 = shalt.err (!%p2991_p0)
}
  0x52   : > { %2653 = dma.hbm_to_vmem [thread:$0]  (!%p3522_p2), %s3534_s24, 128, %s3537_s27, %s4227_s2  }
  0x53   : > { %p2391_p10 = scmp.ge.s32.totalorder %s3313_s19, 1  ;;  %p473_p11 = scmp.lt.s32.totalorder %s3313_s19, 9 }
  0x54   : > { %s3576_s15 = sand.u32 1, %s3281_s11   ;;  %s2496_s25 = sshll.u32 %s3305_s17, 12 }
  0x55   : > { %s2377_s29 = sshll.u32 %s3576_s15, 8  ;;  %p3580_p7 = pnand %p2391_p10, %p473_p11 }
  0x56   : > { %s3587_s16 = scalar_lea.hbm %s4205_s3, %s2496_s25  ;;  %s370_s24 = scalar_lea.vmem [#allocation8], %s2377_s29 }
  0x57   : > { %s4283_s5 = scalar_select %p3580_p7, 1, 0 }
  0x58   : > { %s377_s27 = sshll.u32 %s370_s24, 4  ;;  %s4285_s4 = sld [smem:[#allocation41_spill]]  ;;  %s3589_s27 = int_to_ptr.vmem [resolvable:$true] %s377_s27 }
  0x59   : > { %4284 = sst [smem:[#allocation38_spill]] %s4283_s5  ;;  %s391_s19 = scalar_lea.vmem [#allocation9], %s2377_s29 }
  0x5a   : > { %s398_s26 = sshll.u32 %s391_s19, 4  ;;  %s4241_s22 = scalar_lea.sflag [#allocation10], %s3527_s9  ;;  %s3596_s26 = int_to_ptr.vmem [resolvable:$true] %s398_s26 }
  0x5b   : > { %p3604_p5 = pneg %p3541_p1 }
  0x5d   : > { %s4286_s24 = scalar_select %p3604_p5, 1, 0 }
  0x5e   : > { %s3594_s11 = scalar_lea.hbm %s4285_s4, %s2496_s25  ;;  %s3000_s29 = scalar_lea.hbm %s4285_s4, 16384 }
  0x5f   : > { %s2995_s10 = scalar_lea.hbm %s3594_s11, 4096  ;;  %p3001_p9 = scmp.lt.u32.totalorder %s3594_s11, %s4285_s4 }
  0x60   : > { %p2996_p13 = scmp.ne.s32.totalorder %s3594_s11, %s2995_s10  ;;  %p3002_p4 = scmp.lt.u32.totalorder %s3000_s29, %s2995_s10 }
  0x61   : > { %p3004_p0 = scmp.lt.u32.totalorder %s2995_s10, %s3594_s11 }
  0x62   : > { %p2998_p8 = pnand %p3604_p5, %p2996_p13  ;;  %p3003_p12 = por %p3002_p4, %p3001_p9 }
  0x64   : > { %p2999_p3 = pneg %p2998_p8  ;;  %p3005_p10 = por %p3004_p0, %p3003_p12 }
  0x66   : > { %p3006_p11 = pnand %p3005_p10, %p2999_p3 }
  0x68   : > { %3009 = shalt.err (!%p3006_p11)
}
  0x69   : > { %s3010_s12 = scalar_lea.vmem %s3596_s26, 4096  ;;  %s3316_s1 = smov [#allocation9]  }
  0x6a   : > { %p3011_p13 = scmp.ne.s32.totalorder %s3596_s26, %s3010_s12  ;;  %s3015_s2 = sshll.u32 %s3316_s1, 4  ;;  %s3016_s2 = int_to_ptr.vmem [resolvable:$false] %s3015_s2 }
  0x6b   : > { %s3017_s19 = scalar_lea.vmem %s3016_s2, 8192  ;;  %p3018_p7 = scmp.lt.s32.totalorder %s3596_s26, %s3016_s2 }
  0x6c   : > { %p3013_p8 = pnand %p3011_p13, %p3604_p5  ;;  %p3019_p2 = scmp.lt.s32.totalorder %s3017_s19, %s3010_s12 }
  0x6e   : > { %p3014_p6 = pneg %p3013_p8  ;;  %p3020_p9 = por %p3019_p2, %p3018_p7 }
  0x70   : > { %p3021_p4 = pnand %p3020_p9, %p3014_p6 }
  0x72   : > { %3024 = shalt.err (!%p3021_p4)
}
  0x73   : > { %s4242_s10 = smov 256   ;;  %s4243_s29 = smov 16  }
  0x74   : > { %2659 = dma.hbm_to_vmem [thread:$0]  (!%p3541_p1), %s3594_s11, 4096, %s3596_s26, %s4241_s22, %s4242_s10, %s4242_s10, %s4243_s29  }
  0x75   : > { %s2498_s12 = sshll.u32 %s3305_s17, 10  ;;  %s4287_s7 = sld [smem:[#allocation43_spill]] }
  0x76   : > { %s4288_s19 = sshll.u32 %s3576_s15, 6  ;;  %s4245_s28 = scalar_lea.sflag [#allocation13], %s3527_s9 }
  0x77   : > { %s437_s4 = scalar_lea.vmem [#allocation12], %s4288_s19 }
  0x78   : > { %s444_s20 = sshll.u32 %s437_s4, 4  ;;  %s3642_s20 = int_to_ptr.vmem [resolvable:$true] %s444_s20 }
  0x7b   : > { %s3638_s2 = scalar_lea.hbm %s4287_s7, %s2498_s12  ;;  %s3030_s25 = scalar_lea.hbm %s4287_s7, 4096 }
  0x7c   : > { %s3025_s13 = scalar_lea.hbm %s3638_s2, 1024  ;;  %p3031_p3 = scmp.lt.u32.totalorder %s3638_s2, %s4287_s7 }
  0x7d   : > { %p3026_p2 = scmp.ne.s32.totalorder %s3638_s2, %s3025_s13  ;;  %p3032_p12 = scmp.lt.u32.totalorder %s3030_s25, %s3025_s13 }
  0x7e   : > { %p3034_p10 = scmp.lt.u32.totalorder %s3025_s13, %s3638_s2 }
  0x7f   : > { %p3028_p6 = pnand %p3026_p2, %p3604_p5  ;;  %p3033_p0 = por %p3032_p12, %p3031_p3 }
  0x81   : > { %p3029_p7 = pneg %p3028_p6  ;;  %p3035_p11 = por %p3034_p10, %p3033_p0 }
  0x83   : > { %p3036_p13 = pnand %p3035_p11, %p3029_p7 }
  0x85   : > { %3039 = shalt.err (!%p3036_p13)
}
  0x86   : > { %s3040_s4 = scalar_lea.vmem %s3642_s20, 1024  ;;  %s3319_s19 = smov [#allocation12]  }
  0x87   : > { %p3041_p8 = scmp.ne.s32.totalorder %s3642_s20, %s3040_s4  ;;  %s3045_s11 = sshll.u32 %s3319_s19, 4  ;;  %s3046_s11 = int_to_ptr.vmem [resolvable:$false] %s3045_s11 }
  0x88   : > { %s3047_s22 = scalar_lea.vmem %s3046_s11, 2048  ;;  %p3048_p2 = scmp.lt.s32.totalorder %s3642_s20, %s3046_s11 }
  0x89   : > { %p3043_p9 = pnand %p3041_p8, %p3604_p5  ;;  %p3049_p6 = scmp.lt.s32.totalorder %s3047_s22, %s3040_s4 }
  0x8b   : > { %p3044_p4 = pneg %p3043_p9  ;;  %p3050_p3 = por %p3049_p6, %p3048_p2 }
  0x8d   : > { %p3051_p12 = pnand %p3050_p3, %p3044_p4 }
  0x8f   : > { %3054 = shalt.err (!%p3051_p12)
}
  0x90   : > { %s4250_s13 = smov 64   ;;  %s3321_s26 = smov 4  }
  0x91   : > { %2665 = dma.hbm_to_vmem [thread:$0]  (!%p3541_p1), %s3638_s2, 1024, %s3642_s20, %s4245_s28, %s4250_s13, %s4250_s13, %s3321_s26  }
  0x92   : > { %s3676_s4 = scalar_lea.hbm %s4210_s8, %s2498_s12  ;;  %s4289_s19 = sshll.u32 %s3576_s15, 6 }
  0x93   : > { %s458_s11 = scalar_lea.vmem [#allocation14], %s4289_s19  ;;  %s4290_s10 = sshll.u32 %s3309_s18, 7 }
  0x94   : > { %s465_s22 = sshll.u32 %s458_s11, 4  ;;  %s3687_s5 = scalar_lea.hbm %s4202_s0, %s4290_s10  ;;  %s3680_s22 = int_to_ptr.vmem [resolvable:$true] %s465_s22 }
  0x95   : > { %s328_s20 = scalar_lea.vmem [#allocation3], %s3518_s23  ;;  %s2383_s25 = sshll.u32 %s3576_s15, 3 }
  0x96   : > { %s335_s2 = sshll.u32 %s328_s20, 4  ;;  %s4291_s12 = sand.u32 1, %s3293_s14   ;;  %s336_s2 = int_to_ptr.vmem [resolvable:$true] %s335_s2 }
  0x97   : > { %s325_s1 = scalar_lea.sflag [#allocation4], %s4291_s12  ;;  %s3055_s19 = scalar_lea.hbm %s3687_s5, 128 }
  0x98   : > { %p3056_p7 = scmp.ne.s32.totalorder %s3687_s5, %s3055_s19  ;;  %p4292_p0 = scmp.ne.s32.totalorder %s4280_s21, 0 }
  0x99   : > { %s3060_s10 = scalar_lea.hbm %s4202_s0, 256  ;;  %p3061_p8 = scmp.lt.u32.totalorder %s3687_s5, %s4202_s0 }
  0x9a   : > { %p4293_p10 = pneg %p4292_p0  ;;  %p3062_p9 = scmp.lt.u32.totalorder %s3060_s10, %s3055_s19 }
  0x9b   : > { %p3064_p2 = scmp.lt.u32.totalorder %s3055_s19, %s3687_s5 }
  0x9c   : > { %p3058_p11 = pnand %p3056_p7, %p4293_p10  ;;  %p3063_p4 = por %p3062_p9, %p3061_p8 }
  0x9e   : > { %p3059_p13 = pneg %p3058_p11  ;;  %p3065_p6 = por %p3064_p2, %p3063_p4 }
  0xa0   : > { %p3066_p3 = pnand %p3065_p6, %p3059_p13 }
  0xa2   : > { %3069 = shalt.err (!%p3066_p3)
}
  0xa3   : > { %s3070_s23 = scalar_lea.vmem %s336_s2, 128  ;;  %p4294_p7 = pmov %p4293_p10 }
  0xa4   : > { %p3071_p12 = scmp.ne.s32.totalorder %s336_s2, %s3070_s23  ;;  %s3322_s20 = smov [#allocation3]  }
  0xa5   : > { %s3075_s12 = sshll.u32 %s3322_s20, 4  ;;  %s3076_s12 = int_to_ptr.vmem [resolvable:$false] %s3075_s12 }
  0xa6   : > { %p3073_p10 = pnand %p3071_p12, %p4294_p7  ;;  %s3077_s11 = scalar_lea.vmem %s3076_s12, 256 }
  0xa7   : > { %p3078_p1 = scmp.lt.s32.totalorder %s336_s2, %s3076_s12  ;;  %p3079_p5 = scmp.lt.s32.totalorder %s3077_s11, %s3070_s23 }
  0xa8   : > { %p3074_p11 = pneg %p3073_p10 }
  0xa9   : > { %p3080_p8 = por %p3079_p5, %p3078_p1 }
  0xab   : > { %p3081_p9 = pnand %p3080_p8, %p3074_p11 }
  0xad   : > { %3084 = shalt.err (!%p3081_p9)
}
  0xae   : > { %2650 = dma.hbm_to_vmem [thread:$0]  (!%p4292_p0), %s3687_s5, 128, %s336_s2, %s325_s1  }
  0xaf   : > { %s3085_s28 = scalar_lea.hbm %s3587_s16, 4096  ;;  %p4295_p4 = scmp.ne.s32.totalorder %s4286_s24, 0 }
  0xb0   : > { %p3086_p13 = scmp.ne.s32.totalorder %s3587_s16, %s3085_s28  ;;  %s3090_s10 = scalar_lea.hbm %s4205_s3, 16384 }
  0xb1   : > { %p3091_p1 = scmp.lt.u32.totalorder %s3587_s16, %s4205_s3  ;;  %p3092_p5 = scmp.lt.u32.totalorder %s3090_s10, %s3085_s28 }
  0xb2   : > { %p3088_p2 = pnand %p3086_p13, %p4295_p4  ;;  %p3094_p12 = scmp.lt.u32.totalorder %s3085_s28, %s3587_s16 }
  0xb3   : > { %p3093_p3 = por %p3092_p5, %p3091_p1 }
  0xb4   : > { %p3089_p6 = pneg %p3088_p2 }
  0xb5   : > { %p3095_p7 = por %p3094_p12, %p3093_p3 }
  0xb7   : > { %p3096_p10 = pnand %p3095_p7, %p3089_p6 }
  0xb9   : > { %3099 = shalt.err (!%p3096_p10)
}
  0xba   : > { %s3100_s21 = scalar_lea.vmem %s3589_s27, 4096  ;;  %s3323_s5 = smov [#allocation8]  }
  0xbb   : > { %p3101_p0 = scmp.ne.s32.totalorder %s3589_s27, %s3100_s21  ;;  %s3105_s2 = sshll.u32 %s3323_s5, 4  ;;  %s3106_s2 = int_to_ptr.vmem [resolvable:$false] %s3105_s2 }
  0xbc   : > { %s3107_s1 = scalar_lea.vmem %s3106_s2, 8192  ;;  %p3108_p9 = scmp.lt.s32.totalorder %s3589_s27, %s3106_s2 }
  0xbd   : > { %p3103_p11 = pnand %p3101_p0, %p4295_p4  ;;  %p3109_p13 = scmp.lt.s32.totalorder %s3107_s1, %s3100_s21 }
  0xbf   : > { %p3104_p8 = pneg %p3103_p11  ;;  %p3110_p2 = por %p3109_p13, %p3108_p9 }
  0xc1   : > { %p3111_p1 = pnand %p3110_p2, %p3104_p8 }
  0xc3   : > { %3114 = shalt.err (!%p3111_p1)
}
  0xc4   : > { %p4296_p6 = scmp.ne.s32.totalorder %s4282_s30, 0  ;;  %s4297_s20 = smov 16  }
  0xc5   : > { %s4298_s12 = smov 256   ;;  %s4299_s11 = scalar_lea.sflag [#allocation7], %s3527_s9 }
  0xc6   : > { %2656 = dma.hbm_to_vmem [thread:$0]  (!%p4296_p6), %s3587_s16, 4096, %s3589_s27, %s4299_s11, %s4298_s12, %s4298_s12, %s4297_s20  }
  0xc7   : > { %s2384_s28 = sshll.u32 %s3305_s17, 7  ;;  %s419_s19 = scalar_lea.vmem [#allocation11], %s2383_s25 }
  0xc8   : > { %s426_s7 = sshll.u32 %s419_s19, 4  ;;  %s424_s23 = scalar_lea.hbm %s4208_s6, %s2384_s28  ;;  %s427_s7 = int_to_ptr.vmem [resolvable:$true] %s426_s7 }
  0xc9   : > { %s3115_s21 = scalar_lea.hbm %s424_s23, 128  ;;  %s3120_s1 = scalar_lea.hbm %s4208_s6, 512 }
  0xca   : > { %p3116_p5 = scmp.ne.s32.totalorder %s424_s23, %s3115_s21  ;;  %p3121_p7 = scmp.lt.u32.totalorder %s424_s23, %s4208_s6 }
  0xcb   : > { %p3122_p10 = scmp.lt.u32.totalorder %s3120_s1, %s3115_s21  ;;  %p3124_p11 = scmp.lt.u32.totalorder %s3115_s21, %s424_s23 }
  0xcc   : > { %p3118_p3 = pnand %p3116_p5, %p4295_p4 }
  0xcd   : > { %p3123_p0 = por %p3122_p10, %p3121_p7 }
  0xce   : > { %p3119_p12 = pneg %p3118_p3 }
  0xcf   : > { %p3125_p8 = por %p3124_p11, %p3123_p0 }
  0xd1   : > { %p3126_p9 = pnand %p3125_p8, %p3119_p12 }
  0xd3   : > { %3129 = shalt.err (!%p3126_p9)
}
  0xd4   : > { %s3130_s15 = scalar_lea.vmem %s427_s7, 128  ;;  %s3324_s27 = smov [#allocation11]  }
  0xd5   : > { %p3131_p13 = scmp.ne.s32.totalorder %s427_s7, %s3130_s15  ;;  %s3135_s25 = sshll.u32 %s3324_s27, 4  ;;  %s3136_s25 = int_to_ptr.vmem [resolvable:$false] %s3135_s25 }
  0xd6   : > { %s3137_s20 = scalar_lea.vmem %s3136_s25, 256  ;;  %p3138_p5 = scmp.lt.s32.totalorder %s427_s7, %s3136_s25 }
  0xd7   : > { %p3133_p2 = pnand %p3131_p13, %p4295_p4  ;;  %p3139_p3 = scmp.lt.s32.totalorder %s3137_s20, %s3130_s15 }
  0xd9   : > { %p3134_p1 = pneg %p3133_p2  ;;  %p3140_p6 = por %p3139_p3, %p3138_p5 }
  0xdb   : > { %p3141_p7 = pnand %p3140_p6, %p3134_p1 }
  0xdd   : > { %3144 = shalt.err (!%p3141_p7)
}
  0xde   : > { %p4300_p10 = scmp.ne.s32.totalorder %s4282_s30, 0  ;;  %s4301_s13 = scalar_lea.sflag [#allocation10], %s3527_s9 }
  0xdf   : > { %s3145_s12 = scalar_lea.hbm %s3676_s4, 1024  ;;  %s3150_s19 = scalar_lea.hbm %s4210_s8, 4096 }
  0xe0   : > { %2662 = dma.hbm_to_vmem [thread:$0]  (!%p4300_p10), %s424_s23, 128, %s427_s7, %s4301_s13  }
  0xe1   : > { %p3146_p12 = scmp.ne.s32.totalorder %s3676_s4, %s3145_s12  ;;  %p3151_p6 = scmp.lt.u32.totalorder %s3676_s4, %s4210_s8 }
  0xe2   : > { %p3152_p8 = scmp.lt.u32.totalorder %s3150_s19, %s3145_s12  ;;  %p3154_p13 = scmp.lt.u32.totalorder %s3145_s12, %s3676_s4 }
  0xe3   : > { %p3148_p0 = pnand %p3146_p12, %p4295_p4 }
  0xe4   : > { %p3153_p9 = por %p3152_p8, %p3151_p6 }
  0xe5   : > { %p3149_p11 = pneg %p3148_p0 }
  0xe6   : > { %p3155_p2 = por %p3154_p13, %p3153_p9 }
  0xe8   : > { %p3156_p1 = pnand %p3155_p2, %p3149_p11 }
  0xea   : > { %3159 = shalt.err (!%p3156_p1)
}
  0xeb   : > { %s3160_s7 = scalar_lea.vmem %s3680_s22, 1024  ;;  %s3325_s23 = smov [#allocation14]  }
  0xec   : > { %p3161_p5 = scmp.ne.s32.totalorder %s3680_s22, %s3160_s7  ;;  %s3165_s21 = sshll.u32 %s3325_s23, 4  ;;  %s3166_s21 = int_to_ptr.vmem [resolvable:$false] %s3165_s21 }
  0xed   : > { %s3167_s5 = scalar_lea.vmem %s3166_s21, 2048  ;;  %p3168_p12 = scmp.lt.s32.totalorder %s3680_s22, %s3166_s21 }
  0xee   : > { %p3163_p3 = pnand %p3161_p5, %p4295_p4  ;;  %p3169_p0 = scmp.lt.s32.totalorder %s3167_s5, %s3160_s7 }
  0xf0   : > { %p3164_p7 = pneg %p3163_p3  ;;  %p3170_p6 = por %p3169_p0, %p3168_p12 }
  0xf2   : > { %p3171_p8 = pnand %p3170_p6, %p3164_p7 }
  0xf4   : > { %3174 = shalt.err (!%p3171_p8)
}
  0xf5   : > { %s4302_s2 = smov 64   ;;  %s4303_s1 = scalar_lea.sflag [#allocation13], %s3527_s9 }
  0xf6   : > { %2668 = dma.hbm_to_vmem [thread:$0]  (!%p4300_p10), %s3676_s4, 1024, %s3680_s22, %s4303_s1, %s4302_s2, %s4302_s2, %s3321_s26  }
  0xf7   : > { %s4304_s24 = sld [smem:[#allocation38_spill]] }
  0xfd   : > { %p4305_p4 = scmp.ne.s32.totalorder %s4304_s24, 0 }
  0xfe   : > { %s4306_s16 = sld [smem:[#allocation25_spill]] (!%p4305_p4)  ;;  %s4307_s15 = sld [smem:[#allocation32_spill]] (!%p4305_p4) }
  0xff   : > { %477 = sbr.rel (%p4305_p4) target bundleno = 1957 (0x7a5), region = 56 }
 0x104   : > { %s3787_s27 = sand.u32 (!%p4305_p4), 1, %s4306_s16   ;;  %p4308_p11 = scmp.ne.s32.totalorder (!%p4305_p4), %s4307_s15, 0 }
 0x105   : > { %s3790_s25 = sshll.u32 (!%p4305_p4), %s3787_s27, 3  ;;  %s480_s30 = scalar_lea.sflag (!%p4305_p4), [#allocation4], %s3787_s27 }
 0x106   : > { %s483_s20 = scalar_lea.vmem [#allocation3], %s3790_s25 }
 0x107   : > { %3248 = dma.done.wait (%p4308_p11), %s480_s30, 128  }
 0x108   : > { %3250 = vsyncadd (%p4308_p11), %s480_s30, 4294967168  ;;  %s4309_s9 = sld [smem:[#allocation29_spill]]  ;;  %s492_s22 = scalar_lea.vmem [#allocation6], %s3790_s25 }
 0x10e   : > { %s488_s26 = sand.u32 1, %s4309_s9  }
 0x10f   : > { %s489_s4 = scalar_lea.sflag [#allocation7], %s488_s26 }
 0x110   : > { %3252 = dma.done.wait (%p4308_p11), %s489_s4, 128  }
 0x111   : > { %3254 = vsyncadd (%p4308_p11), %s489_s4, 4294967168  ;;  %s4310_s13 = sld [smem:[#allocation22_spill]]  ;;  %s4311_s12 = sld [smem:[#allocation35_spill]] }
 0x117   : > { %s499_s11 = sand.u32 1, %s4310_s13   ;;  %p4312_p10 = scmp.ne.s32.totalorder %s4311_s12, 0 }
 0x118   : > { %s2394_s28 = sshll.u32 %s499_s11, 8 }
 0x119   : > { %s3805_s19 = scalar_lea.vmem [#allocation8], %s2394_s28 }
 0x11a   : > { %3256 = dma.done.wait (%p4312_p10), %s489_s4, 4096  }
 0x11b   : > { %3258 = vsyncadd (%p4312_p10), %s489_s4, 4294963200  ;;  %s507_s10 = scalar_lea.sflag [#allocation10], %s488_s26  ;;  %s3811_s29 = scalar_lea.vmem [#allocation9], %s2394_s28 }
 0x11c   : > { %3260 = dma.done.wait (%p4312_p10), %s507_s10, 4224  }
 0x11d   : > { %3262 = vsyncadd (%p4312_p10), %s507_s10, 4294963072  ;;  %s2396_s7 = sshll.u32 %s499_s11, 3  ;;  %s2397_s23 = sshll.u32 %s499_s11, 6 }
 0x11e   : > { %s3817_s21 = scalar_lea.vmem [#allocation11], %s2396_s7  ;;  %s525_s5 = scalar_lea.sflag [#allocation13], %s488_s26 }
 0x11f   : > { %s3819_s2 = scalar_lea.vmem [#allocation12], %s2397_s23 }
 0x120   : > { %3264 = dma.done.wait (%p4312_p10), %s525_s5, 2048  }
 0x121   : > { %3266 = vsyncadd (%p4312_p10), %s525_s5, 4294965248  ;;  %s4313_s1 = sld [smem:[#allocation27_spill]]  ;;  %s4314_s24 = sld [smem:[#allocation26_spill]] }
 0x122   : > { %s4315_s9 = sld [smem:[#allocation40_spill]]  ;;  %s4316_s12 = sld [smem:[#allocation42_spill]] }
 0x123   : > { %s3840_s10 = scalar_lea.vmem [#allocation14], %s2397_s23  ;;  %s608_s7 = scalar_lea.vmem [#allocation15], %s3790_s25 }
 0x127   : > { %p609_p9 = scmp.lt.s32.totalorder %s4313_s1, 1  ;;  %p612_p13 = scmp.lt.s32.totalorder %s4314_s24, 3 }
 0x128   : > { %p2401_p2 = scmp.ne.s32.totalorder %s4314_s24, 0 }
 0x129   : > { %s4346_s1 = smov (!%p609_p9, %s4313_s1), 1  ;;  %v621_v0 = vld [vmem:[%s483_s20] sm:$0xff] (!%p2401_p2) }
 0x12a   : > { %s613_s16 = scalar_select %p612_p13, %s4314_s24, 3 }
 0x12b   : > { %s611_s26 = scalar_lea.vmem %s4315_s9, %s4346_s1  ;;  %620 = sbr.rel (%p2401_p2) target bundleno = 306 (0x132), region = 88  ;;  %622 = vst [vmem:[#allocation2] sm:$0xff] (!%p2401_p2), %v621_v0 }
 0x12c   : > { %s2400_s4 = sshll.u32 %s613_s16, 2 }
 0x12d   : > { %s3838_s28 = scalar_lea.vmem %s4316_s12, %s2400_s4 }
 0x132 PF: > { %v2771_v1 = vld [vmem:[%s3805_s19 + $0x4] ss:$16 sps:$4 sm:$0xff]   ;;  %v2773_v2 = vld [vmem:[%s3805_s19 + $0xc] ss:$16 sps:$4 sm:$0xff]   ;;  %v3326_v3 = vmov 0   ;;  %vm3328_vm0 = vmmov 0  }
 0x133   : > { %971 = vmatprep.mubr.bf16.mxu1 %v3326_v3  ;;  %930 = vmatprep.mubr.bf16.mxu0 %v3326_v3  ;;  %v2775_v4 = vld [vmem:[%s3805_s19] ss:$16 sps:$4 sm:$0xff]   ;;  %v2776_v5 = vld [vmem:[%s3805_s19 + $0x8] ss:$16 sps:$4 sm:$0xff]   ;;  %v2777_v6 = vld [vmem:[%s3805_s19 + $0x24] ss:$16 sps:$4 sm:$0xff]  }
 0x134   : > { %898 = vmatprep.subr.bf16.mxu0 %v2771_v1  ;;  %2770 = vset.pattern.permute.xlu0 %v3326_v3  ;;  %v2779_v7 = vld [vmem:[%s3805_s19 + $0x2c] ss:$16 sps:$4 sm:$0xff]   ;;  %v2781_v8 = vld [vmem:[%s3805_s19 + $0x20] ss:$16 sps:$4 sm:$0xff]   ;;  %v2782_v9 = vld [vmem:[%s3805_s19 + $0x28] ss:$16 sps:$4 sm:$0xff]  }
 0x135   : > { %939 = vmatprep.subr.bf16.mxu1 %v2773_v2  ;;  %899 = vmatpush1.bf16.msra.mxu0 %v2775_v4  ;;  %v2783_v10 = vld [vmem:[%s3805_s19 + $0x44] ss:$16 sps:$4 sm:$0xff]   ;;  %v2785_v11 = vld [vmem:[%s3805_s19 + $0x4c] ss:$16 sps:$4 sm:$0xff]   ;;  %v2787_v12 = vld [vmem:[%s3805_s19 + $0x40] ss:$16 sps:$4 sm:$0xff]  }
 0x136   : > { %940 = vmatpush1.bf16.msra.mxu1 %v2776_v5  ;;  %900 = vmatprep.subr.bf16.mxu0 %v2777_v6  ;;  %v2788_v13 = vld [vmem:[%s3805_s19 + $0x48] ss:$16 sps:$4 sm:$0xff]   ;;  %v2789_v14 = vld [vmem:[%s3805_s19 + $0x64] ss:$16 sps:$4 sm:$0xff]   ;;  %v2791_v15 = vld [vmem:[%s3805_s19 + $0x6c] ss:$16 sps:$4 sm:$0xff]  }
 0x137   : > { %941 = vmatprep.subr.bf16.mxu1 %v2779_v7  ;;  %v2793_v16 = vld [vmem:[%s3805_s19 + $0x60] ss:$16 sps:$4 sm:$0xff]   ;;  %v2794_v17 = vld [vmem:[%s3805_s19 + $0x68] ss:$16 sps:$4 sm:$0xff]   ;;  %v2795_v18 = vld [vmem:[%s3805_s19 + $0x84] ss:$16 sps:$4 sm:$0xff]  }
 0x138   : > { %v2797_v19 = vld [vmem:[%s3805_s19 + $0x8c] ss:$16 sps:$4 sm:$0xff]   ;;  %v2799_v20 = vld [vmem:[%s3805_s19 + $0x80] ss:$16 sps:$4 sm:$0xff]   ;;  %v2800_v21 = vld [vmem:[%s3805_s19 + $0x88] ss:$16 sps:$4 sm:$0xff]  }
 0x139   : > { %901 = vmatpush1.bf16.msra.mxu0 %v2781_v8  ;;  %v2801_v22 = vld [vmem:[%s3805_s19 + $0xa4] ss:$16 sps:$4 sm:$0xff]   ;;  %v2803_v23 = vld [vmem:[%s3805_s19 + $0xac] ss:$16 sps:$4 sm:$0xff]   ;;  %v2805_v24 = vld [vmem:[%s3805_s19 + $0xa0] ss:$16 sps:$4 sm:$0xff]  }
 0x13a   : > { %942 = vmatpush1.bf16.msra.mxu1 %v2782_v9  ;;  %902 = vmatprep.subr.bf16.mxu0 %v2783_v10  ;;  %v2806_v25 = vld [vmem:[%s3805_s19 + $0xa8] ss:$16 sps:$4 sm:$0xff]   ;;  %v2807_v26 = vld [vmem:[%s3805_s19 + $0xc4] ss:$16 sps:$4 sm:$0xff]   ;;  %v2809_v27 = vld [vmem:[%s3805_s19 + $0xcc] ss:$16 sps:$4 sm:$0xff]  }
 0x13b   : > { %943 = vmatprep.subr.bf16.mxu1 %v2785_v11  ;;  %v623_v28 = vld [vmem:[#allocation2] sm:$0xff]  ;;  %v2811_v30 = vld [vmem:[%s3805_s19 + $0xc0] ss:$16 sps:$4 sm:$0xff]   ;;  %v2813_v33 = vld [vmem:[%s3805_s19 + $0xe4] ss:$16 sps:$4 sm:$0xff]   ;;  %vm1321_vm1 = vcmask 1043456  }
 0x13c   : > { %v724_v29 = vmul.f32 %v623_v28, %v623_v28  ;;  %v2812_v31 = vld [vmem:[%s3805_s19 + $0xc8] ss:$16 sps:$4 sm:$0xff]   ;;  %v2815_v34 = vld [vmem:[%s3805_s19 + $0xec] ss:$16 sps:$4 sm:$0xff]   ;;  %v2817_v36 = vld [vmem:[%s3805_s19 + $0xe0] ss:$16 sps:$4 sm:$0xff]  }
 0x13d   : > { %903 = vmatpush1.bf16.msra.mxu0 %v2787_v12  ;;  %v2818_v37 = vld [vmem:[%s3805_s19 + $0xe8] ss:$16 sps:$4 sm:$0xff]   ;;  %v2821_v39 = vld [vmem:[%s3811_s29 + $0x4] ss:$16 sps:$4 sm:$0xff]   ;;  %v2845_v42 = vld [vmem:[%s3811_s29 + $0xc] ss:$16 sps:$4 sm:$0xff]  }
 0x13e   : > { %944 = vmatpush1.bf16.msra.mxu1 %v2788_v13  ;;  %904 = vmatprep.subr.bf16.mxu0 %v2789_v14  ;;  %v725_v32 = vrot.slane %v724_v29, 4  ;;  %v625_v46 = vld [vmem:[%s611_s26] sm:$0x1]  ;;  %v2819_v48 = vld [vmem:[%s3811_s29] ss:$16 sps:$4 sm:$0xff]   ;;  %vm1309_vm2 = vcmask 64512  }
 0x13f   : > { %945 = vmatprep.subr.bf16.mxu1 %v2791_v15  ;;  %1224 = vperm.xlu0 %2770, %v625_v46   ;;  %v2824_v50 = vld [vmem:[%s3811_s29 + $0x24] ss:$16 sps:$4 sm:$0xff]   ;;  %v2843_v51 = vld [vmem:[%s3811_s29 + $0x8] ss:$16 sps:$4 sm:$0xff]   ;;  %v2848_v53 = vld [vmem:[%s3811_s29 + $0x2c] ss:$16 sps:$4 sm:$0xff]  }
 0x140   : > { %v726_v35 = vadd.f32 %v725_v32, %v724_v29  ;;  %v2822_v54 = vld [vmem:[%s3811_s29 + $0x20] ss:$16 sps:$4 sm:$0xff]   ;;  %v2827_v55 = vld [vmem:[%s3811_s29 + $0x44] ss:$16 sps:$4 sm:$0xff]   ;;  %v2846_v56 = vld [vmem:[%s3811_s29 + $0x28] ss:$16 sps:$4 sm:$0xff]  }
 0x141   : > { %905 = vmatpush1.bf16.msra.mxu0 %v2793_v16  ;;  %v2851_v57 = vld [vmem:[%s3811_s29 + $0x4c] ss:$16 sps:$4 sm:$0xff]   ;;  %v2825_v58 = vld [vmem:[%s3811_s29 + $0x40] ss:$16 sps:$4 sm:$0xff]   ;;  %v2830_v59 = vld [vmem:[%s3811_s29 + $0x64] ss:$16 sps:$4 sm:$0xff]  }
 0x142   : > { %946 = vmatpush1.bf16.msra.mxu1 %v2794_v17  ;;  %906 = vmatprep.subr.bf16.mxu0 %v2795_v18  ;;  %v727_v38 = vrot.slane %v726_v35, 2  ;;  %v2849_v60 = vld [vmem:[%s3811_s29 + $0x48] ss:$16 sps:$4 sm:$0xff]   ;;  %v2854_v61 = vld [vmem:[%s3811_s29 + $0x6c] ss:$16 sps:$4 sm:$0xff]   ;;  %v3327_v18 = vmov 0.0  }
 0x143   : > { %947 = vmatprep.subr.bf16.mxu1 %v2797_v19  ;;  %v2828_v62 = vld [vmem:[%s3811_s29 + $0x60] ss:$16 sps:$4 sm:$0xff]   ;;  %v2833_v63 = vld [vmem:[%s3811_s29 + $0x84] ss:$16 sps:$4 sm:$0xff]   ;;  %v2852_v0 = vld [vmem:[%s3811_s29 + $0x68] ss:$16 sps:$4 sm:$0xff]  }
 0x144   : > { %v728_v40 = vadd.f32 %v727_v38, %v726_v35  ;;  %v2857_v1 = vld [vmem:[%s3811_s29 + $0x8c] ss:$16 sps:$4 sm:$0xff]   ;;  %v2831_v2 = vld [vmem:[%s3811_s29 + $0x80] ss:$16 sps:$4 sm:$0xff]   ;;  %v2855_v4 = vld [vmem:[%s3811_s29 + $0x88] ss:$16 sps:$4 sm:$0xff]  }
 0x145   : > { %907 = vmatpush1.bf16.msra.mxu0 %v2799_v20  ;;  %v2860_v5 = vld [vmem:[%s3811_s29 + $0xac] ss:$16 sps:$4 sm:$0xff]   ;;  %v2834_v6 = vld [vmem:[%s3811_s29 + $0xa0] ss:$16 sps:$4 sm:$0xff]   ;;  %v2839_v7 = vld [vmem:[%s3811_s29 + $0xc4] ss:$16 sps:$4 sm:$0xff]  }
 0x146   : > { %948 = vmatpush1.bf16.msra.mxu1 %v2800_v21  ;;  %908 = vmatprep.subr.bf16.mxu0 %v2801_v22  ;;  %v729_v41 = vrot.slane %v728_v40, 1  ;;  %v2858_v8 = vld [vmem:[%s3811_s29 + $0xa8] ss:$16 sps:$4 sm:$0xff]   ;;  %v2863_v9 = vld [vmem:[%s3811_s29 + $0xcc] ss:$16 sps:$4 sm:$0xff]   ;;  %vm1733_vm3 = vcmask 130112  }
 0x147   : > { %949 = vmatprep.subr.bf16.mxu1 %v2803_v23  ;;  %v2837_v10 = vld [vmem:[%s3811_s29 + $0xc0] ss:$16 sps:$4 sm:$0xff]   ;;  %v2842_v11 = vld [vmem:[%s3811_s29 + $0xe4] ss:$16 sps:$4 sm:$0xff]   ;;  %v2861_v12 = vld [vmem:[%s3811_s29 + $0xc8] ss:$16 sps:$4 sm:$0xff]  }
 0x148   : > { %v730_v43 = vadd.f32 %v729_v41, %v728_v40  ;;  %v2866_v13 = vld [vmem:[%s3811_s29 + $0xec] ss:$16 sps:$4 sm:$0xff]   ;;  %v2840_v14 = vld [vmem:[%s3811_s29 + $0xe0] ss:$16 sps:$4 sm:$0xff]   ;;  %v2864_v16 = vld [vmem:[%s3811_s29 + $0xe8] ss:$16 sps:$4 sm:$0xff]  }
 0x149   : > { %909 = vmatpush1.bf16.msra.mxu0 %v2805_v24  ;;  %v624_v15 = vld [vmem:[%s492_s22] sm:$0xff]  ;;  %v3941_v41 = vld [vmem:[%s3817_s21] sm:$0xff]  ;;  %vm1740_vm4 = vcmask 195712   ;;  %vm1747_vm5 = vcmask 261312   ;;  %vm1754_vm6 = vcmask 326912   ;;  %vm1761_vm7 = vcmask 392512  }
 0x14a   : > { %950 = vmatpush1.bf16.msra.mxu1 %v2806_v25  ;;  %910 = vmatprep.subr.bf16.mxu0 %v2807_v26  ;;  %v732_v44 = vmul.f32 0.125, %v730_v43  ;;  %v737_v17 = vpack.c.bf16 %v624_v15, %v624_v15  ;;  %v690_v35 = vld [vmem:[%s3838_s28] sm:$0xf]  ;;  %vm1768_vm8 = vcmask 458112   ;;  %vm1775_vm9 = vcmask 523712   ;;  %s4318_s22 = sld [smem:[#allocation27_spill]] }
 0x14b   : > { %951 = vmatprep.subr.bf16.mxu1 %v2809_v27  ;;  %vm1782_vm10 = vcmask 589312   ;;  %vm1789_vm11 = vcmask 654912   ;;  %vm1796_vm12 = vcmask 720512   ;;  %vm1803_vm13 = vcmask 786112   ;;  %s2138_s5 = sshll.u32 %s608_s7, 4  ;;  %s4320_s24 = sld [smem:[#allocation44_spill]]  ;;  %s4139_s5 = int_to_ptr.vmem [resolvable:$true] %s2138_s5 }
 0x14c   : > { %v733_v45 = vadd.f32 1e-08, %v732_v44  ;;  %vm1810_vm14 = vcmask 851712   ;;  %vm1817_vm15 = vcmask 917312   ;;  %s2125_s15 = scalar_lea.sflag [#allocation5], %s3787_s27  ;;  %s3175_s30 = scalar_lea.vmem %s4139_s5, 128 }
 0x14d   : > { %911 = vmatpush1.bf16.msra.mxu0 %v2811_v30  ;;  %v1227_v30 = vlaneseq  ;;  %p3176_p1 = scmp.ne.s32.totalorder %s4139_s5, %s3175_s30  ;;  %s3329_s9 = smov [#allocation15]  }
 0x14e   : > { %952 = vmatpush1.bf16.msra.mxu1 %v2812_v31  ;;  %912 = vmatprep.subr.bf16.mxu0 %v2813_v33  ;;  %2883 = vrsqrt.f32 %v733_v45  ;;  %s3179_s26 = sshll.u32 %s3329_s9, 4  ;;  %s3180_s26 = int_to_ptr.vmem [resolvable:$false] %s3179_s26 }
 0x14f   : > { %953 = vmatprep.subr.bf16.mxu1 %v2815_v34  ;;  %v3933_v31 = vshrl.u32 %v1227_v30, 7  ;;  %s3181_s4 = scalar_lea.vmem %s3180_s26, 256  ;;  %p3182_p12 = scmp.lt.s32.totalorder %s4139_s5, %s3180_s26 }
 0x150   : > { %s2493_s21 = sshll.u32 %s4318_s22, 7  ;;  %p3183_p0 = scmp.lt.s32.totalorder %s3181_s4, %s3175_s30 }
 0x151   : > { %913 = vmatpush1.bf16.msra.mxu0 %v2817_v36  ;;  %v1229_v32 = vsub.s32 0, %v3933_v31  ;;  %v1243_v38 = vsub.s32 2, %v3933_v31  ;;  %s4137_s16 = scalar_lea.hbm %s4320_s24, %s2493_s21 }
 0x152   : > { %954 = vmatpush1.bf16.msra.mxu1 %v2818_v37  ;;  %1140 = vmatprep.subr.bf16.mxu0 %v2821_v39  ;;  %v1239_v37 = vsub.s32 1, %v3933_v31  ;;  %v1247_v39 = vsub.s32 3, %v3933_v31  ;;  %p3184_p6 = por %p3183_p0, %p3182_p12 }
 0x153   : > { %1181 = vmatprep.subr.bf16.mxu1 %v2845_v42  ;;  %v1260_v46 = vrot.slane %v3941_v41, %v1229_v32 }
 0x158   : > { %v2884_v47 = vpop.eup %2883 }
 0x159   : > { %v735_v49 = vmul.f32 %v2884_v47, %v623_v28 }
 0x15b   : > { %v736_v52 = vpack.c.bf16 %v735_v49, %v735_v49 }
 0x15d   : > { %972 = vmatmul.mubr.bf16.vlgmr.msra.gmra.mrb[0].mxu1 %v736_v52  ;;  %931 = vmatmul.mubr.bf16.vlgmr.msra.gmra.mrb[0].mxu0 %v736_v52 }
 0x15e   : > { %1141 = vmatpush1.bf16.msra.mxu0 %v2819_v48  ;;  %1172 = vmatprep.mubr.bf16.mxu0 %v3326_v3 }
 0x15f   : > { %1142 = vmatprep.subr.bf16.mxu0 %v2824_v50  ;;  %1182 = vmatpush1.bf16.msra.mxu1 %v2843_v51 }
 0x160   : > { %1183 = vmatprep.subr.bf16.mxu1 %v2848_v53  ;;  %1213 = vmatprep.mubr.bf16.mxu1 %v3326_v3  ;;  %v2836_v3 = vld [vmem:[%s3811_s29 + $0xa4] ss:$16 sps:$4 sm:$0xff]   ;;  %s4319_s29 = sld [smem:[#allocation36_spill]] }
 0x162   : > { %1143 = vmatpush1.bf16.msra.mxu0 %v2822_v54 }
 0x163   : > { %1144 = vmatprep.subr.bf16.mxu0 %v2827_v55  ;;  %1184 = vmatpush1.bf16.msra.mxu1 %v2846_v56 }
 0x164   : > { %1185 = vmatprep.subr.bf16.mxu1 %v2851_v57 }
 0x166   : > { %1145 = vmatpush1.bf16.msra.mxu0 %v2825_v58  ;;  %p4321_p5 = scmp.ne.s32.totalorder %s4319_s29, 0 }
 0x167   : > { %1146 = vmatprep.subr.bf16.mxu0 %v2830_v59  ;;  %1186 = vmatpush1.bf16.msra.mxu1 %v2849_v60 }
 0x168   : > { %1187 = vmatprep.subr.bf16.mxu1 %v2854_v61  ;;  %p3177_p3 = pnand %p3176_p1, %p4321_p5 }
 0x16a   : > { %1147 = vmatpush1.bf16.msra.mxu0 %v2828_v62  ;;  %p3178_p7 = pneg %p3177_p3 }
 0x16b   : > { %1148 = vmatprep.subr.bf16.mxu0 %v2833_v63  ;;  %1188 = vmatpush1.bf16.msra.mxu1 %v2852_v0 }
 0x16c   : > { %1189 = vmatprep.subr.bf16.mxu1 %v2857_v1  ;;  %p3185_p8 = pnand %p3184_p6, %p3178_p7 }
 0x16e   : > { %1149 = vmatpush1.bf16.msra.mxu0 %v2831_v2 }
 0x16f   : > { %1150 = vmatprep.subr.bf16.mxu0 %v2836_v3  ;;  %1190 = vmatpush1.bf16.msra.mxu1 %v2855_v4 }
 0x170   : > { %1191 = vmatprep.subr.bf16.mxu1 %v2860_v5 }
 0x172   : > { %1151 = vmatpush1.bf16.msra.mxu0 %v2834_v6 }
 0x173   : > { %1152 = vmatprep.subr.bf16.mxu0 %v2839_v7  ;;  %1192 = vmatpush1.bf16.msra.mxu1 %v2858_v8 }
 0x174   : > { %1193 = vmatprep.subr.bf16.mxu1 %v2863_v9 }
 0x176   : > { %1153 = vmatpush1.bf16.msra.mxu0 %v2837_v10 }
 0x177   : > { %1154 = vmatprep.subr.bf16.mxu0 %v2842_v11  ;;  %1194 = vmatpush1.bf16.msra.mxu1 %v2861_v12 }
 0x178   : > { %1195 = vmatprep.subr.bf16.mxu1 %v2866_v13 }
 0x17a   : > { %1155 = vmatpush1.bf16.msra.mxu0 %v2840_v14 }
 0x17b   : > { %1196 = vmatpush1.bf16.msra.mxu1 %v2864_v16  ;;  %2540 = vmatprep.subr.bf16.mxu0 %v3327_v18 }
 0x17c   : > { %2546 = vmatprep.subr.bf16.mxu1 %v3327_v18 }
 0x17d   : > { %1173 = vmatmul.mubr.bf16.vlgmr.msra.gmra.mrb[4].mxu0 %v737_v17 }
 0x17e   : > { %1214 = vmatmul.mubr.bf16.vlgmr.msra.gmra.mrb[4].mxu1 %v737_v17  ;;  %2542 = vmatprep.mubr.msk.bf16.mxu0 %vm3328_vm0, %v3327_v18 }
 0x17f   : > { %2548 = vmatprep.mubr.msk.bf16.mxu1 %vm3328_vm0, %v3327_v18 }
 0x1be   : > { %v1225_v33 = vpop.permute.xlu0 %1224 }
 0x1bf   : > { %v1230_v34 = vrot.slane %v1225_v33, %v1229_v32 }
 0x1c1   : > { %v1231_v36 = vmul.f32 %v1230_v34, %v690_v35 }
 0x1c3   : > { %v1236_v40 = vrot.slane %v1231_v36, %v1229_v32  ;;  %v1240_v42 = vrot.slane %v1231_v36, %v1239_v37  ;;  %v1244_v43 = vrot.slane %v1231_v36, %v1243_v38  ;;  %v1248_v44 = vrot.slane %v1231_v36, %v1247_v39 }
 0x230   : > { %v973_v19 = vpop.f32.mrb[0].mxu1  ;;  %v932_v20 = vpop.f32.mrb[0].mxu0 }
 0x231   : > { %v1371_v21 = vpack.c.bf16 %v973_v19, %v973_v19  ;;  %v3928_v22 = vpop.f32.mrb[1].mxu1  ;;  %v934_v23 = vpop.f32.mrb[1].mxu0  ;;  %v1267_v61 = vpack.c.bf16 %v932_v20, %v932_v20 }
 0x232   : > { %v977_v24 = vpop.f32.mrb[2].mxu1  ;;  %v1317_v25 = vpack.c.bf16 %v934_v23, %v934_v23  ;;  %v936_v26 = vpop.f32.mrb[2].mxu0 }
 0x233   : > { %1372 = vxpose.xlu0.c.b16.start.end [1/1] (short) %v1371_v21, 128  ;;  %v978_v27 = vpop.f32.mrb[3].mxu1  ;;  %v937_v28 = vpop.f32.mrb[3].mxu0 }
 0x234   : > { %v1323_v29 = vsel %vm1321_vm1, %v1317_v25, 0 }
 0x235   : > { %2547 = vmatpush3.bf16.msra.mxu1 %v1323_v29 }
 0x236   : > { %2570 = vmatprep.subr.bf16.mxu1 %v3327_v18 }
 0x250   : > { %v1174_v45 = vpop.f32.mrb[4].mxu0 }
 0x251   : > { %v1253_v47 = vadd.f32 %v1236_v40, %v1174_v45  ;;  %v1176_v48 = vpop.f32.mrb[5].mxu0  ;;  %v1215_v49 = vpop.f32.mrb[4].mxu1 }
 0x252   : > { %v1254_v50 = vadd.f32 %v1240_v42, %v1176_v48  ;;  %v1178_v51 = vpop.f32.mrb[6].mxu0  ;;  %v1255_v52 = vadd.f32 %v1244_v43, %v1215_v49  ;;  %v1217_v53 = vpop.f32.mrb[5].mxu1 }
 0x253   : > { %v1268_v54 = vpack.c.bf16 %v1253_v47, %v1253_v47  ;;  %v1179_v55 = vpop.f32.mrb[7].mxu0  ;;  %v3950_v56 = vadd.f32 %v1248_v44, %v1217_v53  ;;  %v1219_v57 = vpop.f32.mrb[6].mxu1 }
 0x254   : > { %v1388_v58 = vpack.c.bf16 %v1254_v50, %v1254_v50  ;;  %v3952_v59 = vadd.f32 %v1260_v46, %v1255_v52  ;;  %v1220_v60 = vpop.f32.mrb[7].mxu1 }
 0x255   : > { %2541 = vmatpush3.bf16.xpose.msra.mxu0 %v1268_v54 }
 0x256   : > { %2630 = vmatprep.subr.msk.bf16.mxu0 %vm1321_vm1, %v1388_v58  ;;  %v1414_v62 = vsel %vm1321_vm1, %v1388_v58, 0  ;;  %vm1824_vm1 = vcmask 982912  }
 0x25c   : > { %2543 = vmatmul.mubr.bf16.vlgmr.msra.gmra.mrb[8].mxu0 %v1267_v61 }
 0x25d   : > { %2553 = vmatpush3.bf16.msra.mxu0 %v1414_v62 }
 0x25e   : > { %2590 = vmatprep.subr.bf16.mxu0 %v3327_v18 }
 0x299   : > { %v1380_v63 = vpop.trf.xlu0 }
 0x29a   : > { %2554 = vmatprep.mubr.msk.bf16.mxu0 %vm1309_vm2, %v1380_v63 }
 0x29d   : > { %v1381_v0 = vpop.trf.xlu0 }
 0x29e   : > { %2555 = vmatmul.mubr.msk.bf16.vlgmr.msra.gmra.mrb[12].mxu0 %vm1309_vm2, %v1381_v0 }
 0x2a1   : > { %v1382_v1 = vpop.trf.xlu0 }
 0x2a2   : > { %2558 = vmatprep.mubr.msk.bf16.mxu0 %vm1309_vm2, %v1382_v1 }
 0x2a5   : > { %v1383_v2 = vpop.trf.xlu0 }
 0x2a6   : > { %2559 = vmatmul.mubr.msk.bf16.gmra.mrb[16].mxu0 %vm1309_vm2, %v1383_v2 }
 0x2a9   : > { %v1384_v3 = vpop.trf.xlu0 }
 0x2aa   : > { %2562 = vmatprep.mubr.msk.bf16.mxu0 %vm1309_vm2, %v1384_v3 }
 0x2ad   : > { %v1385_v4 = vpop.trf.xlu0 }
 0x2ae   : > { %2563 = vmatmul.mubr.msk.bf16.gmra.mrb[20].mxu0 %vm1309_vm2, %v1385_v4 }
 0x2b1   : > { %v1386_v5 = vpop.trf.xlu0 }
 0x2b2   : > { %2566 = vmatprep.mubr.msk.bf16.mxu0 %vm1309_vm2, %v1386_v5 }
 0x2b5   : > { %v1387_v6 = vpop.trf.xlu0 }
 0x2b6   : > { %2567 = vmatmul.mubr.msk.bf16.gmra.mrb[24].mxu0 %vm1309_vm2, %v1387_v6 }
 0x2b7   : > { %2606 = vmatprep.mubr.msk.bf16.mxu0 %vm3328_vm0, %v3327_v18 }
 0x32f   : > { %v1303_v7 = vpop.f32.mrb[8].mxu0 }
 0x330   : > { %v1310_v8 = vsel %vm1309_vm2, %v1303_v7, -inf  ;;  %v2544_v9 = vpop.f32.mrb[9].mxu0 }
 0x331   : > { %1311 = vmax.xlane.f32.xlu1 %v1310_v8  ;;  %v1306_v10 = vpop.f32.mrb[10].mxu0 }
 0x332   : > { %v2545_v11 = vpop.f32.mrb[11].mxu0 }
 0x371   : > { %v2556_v12 = vpop.f32.mrb[12].mxu0 }
 0x372   : > { %v1450_v13 = vpop.f32.mrb[13].mxu0 }
 0x373   : > { %1513 = vmax.xlane.f32.xlu1 %v1450_v13  ;;  %v2557_v14 = vpop.f32.mrb[14].mxu0 }
 0x374   : > { %v1453_v15 = vpop.f32.mrb[15].mxu0 }
 0x377   : > { %1515 = vmax.xlane.f32.xlu1 %v1453_v15 }
 0x379   : > { %v3968_v16 = vpop.f32.mrb[16].mxu0 }
 0x37a   : > { %v1466_v17 = vpop.f32.mrb[17].mxu0 }
 0x37b   : > { %1517 = vmax.xlane.f32.xlu1 %v2556_v12  ;;  %v3970_v19 = vpop.f32.mrb[18].mxu0 }
 0x37c   : > { %v1469_v20 = vpop.f32.mrb[19].mxu0 }
 0x37f   : > { %1519 = vmax.xlane.f32.xlu1 %v2557_v14 }
 0x381   : > { %v3972_v21 = vpop.f32.mrb[20].mxu0 }
 0x382   : > { %v3974_v23 = vpop.f32.mrb[21].mxu0 }
 0x383   : > { %1521 = vmax.xlane.f32.xlu1 %v1466_v17  ;;  %1529 = vmax.xlane.f32.xlu0 %v3974_v23  ;;  %v3977_v24 = vpop.f32.mrb[22].mxu0 }
 0x384   : > { %v3979_v25 = vpop.f32.mrb[23].mxu0 }
 0x387   : > { %1523 = vmax.xlane.f32.xlu1 %v1469_v20 }
 0x389   : > { %v3981_v26 = vpop.f32.mrb[24].mxu0 }
 0x38a   : > { %v3983_v27 = vpop.f32.mrb[25].mxu0 }
 0x38b   : > { %1525 = vmax.xlane.f32.xlu1 %v3968_v16  ;;  %v3986_v28 = vpop.f32.mrb[26].mxu0 }
 0x38c   : > { %v3988_v29 = vpop.f32.mrb[27].mxu0 }
 0x38f   : > { %1527 = vmax.xlane.f32.xlu1 %v3970_v19 }
 0x393   : > { %1531 = vmax.xlane.f32.xlu1 %v3979_v25 }
 0x397   : > { %1533 = vmax.xlane.f32.xlu1 %v3972_v21 }
 0x39b   : > { %1535 = vmax.xlane.f32.xlu1 %v3977_v24 }
 0x39f   : > { %1537 = vmax.xlane.f32.xlu1 %v3983_v27 }
 0x3a3   : > { %1539 = vmax.xlane.f32.xlu1 %v3988_v29 }
 0x3a7   : > { %1541 = vmax.xlane.f32.xlu1 %v3981_v26 }
 0x3ab   : > { %1543 = vmax.xlane.f32.xlu1 %v3986_v28 }
 0x3af   : > { %1871 = vadd.xlane.f32.xlu1 %v3952_v59 }
 0x3be   : > { %v1312_v32 = vpop.xlane.xlu1 %1311 }
 0x3bf   : > { %v1313_v33 = vsub.f32 %v1303_v7, %v1312_v32 }
 0x3c1   : > { %v1314_v34 = vmul.f32 1.442695, %v1313_v33 }
 0x3c3   : > { %2885 = vpow2.f32 %v1314_v34 }
 0x3cd   : > { %v3999_v35 = vpop.eup %2885 }
 0x3ce   : > { %v1316_v36 = vpack.c.bf16 %v3999_v35, %v3999_v35 }
 0x3d0   : > { %2549 = vmatmul.mubr.msk.bf16.vlgmr.msra.gmra.mrb[8].mxu1 %vm1309_vm2, %v1316_v36 }
 0x3d1   : > { %2586 = vmatprep.mubr.msk.bf16.mxu1 %vm3328_vm0, %v3327_v18 }
 0x400   : > { %v1514_v40 = vpop.xlane.xlu1 %1513 }
 0x401   : > { %v1545_v42 = vsub.f32 %v1450_v13, %v1514_v40 }
 0x403   : > { %v1561_v43 = vmul.f32 1.442695, %v1545_v42 }
 0x404   : > { %v1516_v44 = vpop.xlane.xlu1 %1515 }
 0x405   : > { %v1546_v45 = vsub.f32 %v1453_v15, %v1516_v44  ;;  %2887 = vpow2.f32 %v1561_v43 }
 0x407   : > { %v1563_v46 = vmul.f32 1.442695, %v1546_v45 }
 0x408   : > { %v1518_v47 = vpop.xlane.xlu1 %1517 }
 0x409   : > { %2889 = vpow2.f32 %v1563_v46  ;;  %v1547_v48 = vsub.f32 %v2556_v12, %v1518_v47 }
 0x40b   : > { %v1565_v49 = vmul.f32 1.442695, %v1547_v48 }
 0x40c   : > { %v1520_v50 = vpop.xlane.xlu1 %1519 }
 0x40d   : > { %2891 = vpow2.f32 %v1565_v49  ;;  %v1548_v51 = vsub.f32 %v2557_v14, %v1520_v50 }
 0x40f   : > { %v1567_v52 = vmul.f32 1.442695, %v1548_v51  ;;  %v2888_v55 = vpop.eup %2887 }
 0x410   : > { %v1522_v53 = vpop.xlane.xlu1 %1521  ;;  %v1530_v2 = vpop.xlane.xlu0 %1529 }
 0x411   : > { %2893 = vpow2.f32 %v1567_v52  ;;  %v1549_v54 = vsub.f32 %v1466_v17, %v1522_v53  ;;  %v1553_v6 = vsub.f32 %v3974_v23, %v1530_v2 }
 0x413   : > { %v2890_v57 = vpop.eup %2889  ;;  %v1569_v58 = vmul.f32 1.442695, %v1549_v54  ;;  %v1577_v11 = vmul.f32 1.442695, %v1553_v6  ;;  %v2869_v6 = vld [vmem:[%s3819_s2 + $0x10] sm:$0xff]  }
 0x414   : > { %v1524_v60 = vpop.xlane.xlu1 %1523  ;;  %v1594_v61 = vpack.c.bf16 %v2890_v57, %v2888_v55 }
 0x415   : > { %v1550_v62 = vsub.f32 %v1469_v20, %v1524_v60  ;;  %2895 = vpow2.f32 %v1569_v58 }
 0x416   : > { %2571 = vmatpush3.bf16.xpose.msra.mxu1 %v1594_v61 }
 0x417   : > { %v2892_v63 = vpop.eup %2891  ;;  %v1571_v0 = vmul.f32 1.442695, %v1550_v62  ;;  %2572 = vmatprep.subr.bf16.mxu1 %v3327_v18 }
 0x418   : > { %v1526_v1 = vpop.xlane.xlu1 %1525  ;;  %1646 = vadd.xlane.f32.xlu1 %v2892_v63 }
 0x419   : > { %2897 = vpow2.f32 %v1571_v0  ;;  %v1551_v3 = vsub.f32 %v3968_v16, %v1526_v1 }
 0x41b   : > { %v2894_v4 = vpop.eup %2893  ;;  %v1573_v5 = vmul.f32 1.442695, %v1551_v3 }
 0x41c   : > { %v1528_v7 = vpop.xlane.xlu1 %1527  ;;  %1648 = vadd.xlane.f32.xlu0 %v2894_v4  ;;  %1642 = vadd.xlane.f32.xlu1 %v2888_v55  ;;  %v1595_v8 = vpack.c.bf16 %v2894_v4, %v2892_v63 }
 0x41d   : > { %2899 = vpow2.f32 %v1573_v5  ;;  %v1552_v9 = vsub.f32 %v3970_v19, %v1528_v7  ;;  %v2868_v5 = vld [vmem:[%s3819_s2 + $0x8] sm:$0xff]   ;;  %v2870_v7 = vld [vmem:[%s3819_s2 + $0x18] sm:$0xff]  }
 0x41e   : > { %2573 = vmatpush3.bf16.xpose.msra.mxu1 %v1595_v8  ;;  %v2872_v8 = vld [vmem:[%s3819_s2 + $0x28] sm:$0xff]  }
 0x41f   : > { %v1575_v10 = vmul.f32 1.442695, %v1552_v9  ;;  %2574 = vmatprep.subr.bf16.mxu1 %v3327_v18  ;;  %v2896_v14 = vpop.eup %2895  ;;  %v2873_v9 = vld [vmem:[%s3819_s2 + $0x30] sm:$0xff]  }
 0x420   : > { %v1532_v12 = vpop.xlane.xlu1 %1531  ;;  %1644 = vadd.xlane.f32.xlu1 %v2890_v57 }
 0x421   : > { %2901 = vpow2.f32 %v1575_v10  ;;  %v1554_v13 = vsub.f32 %v3979_v25, %v1532_v12  ;;  %v2874_v10 = vld [vmem:[%s3819_s2 + $0x38] sm:$0xff]  }
 0x422   : > { %2903 = vpow2.f32 %v1577_v11 }
 0x423   : > { %v2898_v15 = vpop.eup %2897  ;;  %v1579_v16 = vmul.f32 1.442695, %v1554_v13 }
 0x424   : > { %v1534_v17 = vpop.xlane.xlu1 %1533  ;;  %v1596_v20 = vpack.c.bf16 %v2898_v15, %v2896_v14 }
 0x425   : > { %2905 = vpow2.f32 %v1579_v16  ;;  %v1555_v23 = vsub.f32 %v3972_v21, %v1534_v17 }
 0x426   : > { %2575 = vmatpush3.bf16.xpose.msra.mxu1 %v1596_v20 }
 0x427   : > { %v2900_v19 = vpop.eup %2899  ;;  %v1581_v32 = vmul.f32 1.442695, %v1555_v23  ;;  %2576 = vmatprep.subr.bf16.mxu1 %v3327_v18  ;;  %v4055_v23 = vand.u32 127, %v1227_v30 }
 0x428   : > { %v1536_v33 = vpop.xlane.xlu1 %1535  ;;  %1654 = vadd.xlane.f32.xlu1 %v2900_v19 }
 0x429   : > { %2907 = vpow2.f32 %v1581_v32  ;;  %v1556_v34 = vsub.f32 %v3977_v24, %v1536_v33  ;;  %v1735_v32 = vadd.s32 4294967280, %v4055_v23  ;;  %v1742_v33 = vadd.s32 4294967272, %v4055_v23 }
 0x42b   : > { %v2902_v25 = vpop.eup %2901  ;;  %v1583_v36 = vmul.f32 1.442695, %v1556_v34  ;;  %v1745_v30 = vsub.s32 %v1742_v33, %v3933_v31 }
 0x42c   : > { %1656 = vadd.xlane.f32.xlu0 %v2902_v25  ;;  %v1538_v40 = vpop.xlane.xlu1 %1537  ;;  %1650 = vadd.xlane.f32.xlu1 %v2896_v14  ;;  %v1597_v42 = vpack.c.bf16 %v2902_v25, %v2900_v19  ;;  %v2904_v21 = vpop.eup %2903  ;;  %v1728_v19 = vadd.s32 4294967288, %v4055_v23  ;;  %v1726_v25 = vsub.s32 %v4055_v23, %v3933_v31 }
 0x42d   : > { %2909 = vpow2.f32 %v1583_v36  ;;  %v1557_v43 = vsub.f32 %v3983_v27, %v1538_v40 }
 0x42e   : > { %2577 = vmatpush3.bf16.xpose.msra.mxu1 %v1597_v42  ;;  %v1731_v36 = vsub.s32 %v1728_v19, %v3933_v31  ;;  %v1805_v19 = vadd.s32 4294967200, %v4055_v23 }
 0x42f   : > { %v2906_v44 = vpop.eup %2905  ;;  %v1585_v45 = vmul.f32 1.442695, %v1557_v43  ;;  %2578 = vmatprep.subr.bf16.mxu1 %v3327_v18  ;;  %v1738_v43 = vsub.s32 %v1735_v32, %v3933_v31 }
 0x430   : > { %1652 = vadd.xlane.f32.xlu0 %v2898_v15  ;;  %v1540_v46 = vpop.xlane.xlu1 %1539  ;;  %v1598_v47 = vpack.c.bf16 %v2906_v44, %v2904_v21 }
 0x431   : > { %2911 = vpow2.f32 %v1585_v45  ;;  %v1558_v24 = vsub.f32 %v3988_v29, %v1540_v46 }
 0x433   : > { %v2908_v48 = vpop.eup %2907  ;;  %v1587_v49 = vmul.f32 1.442695, %v1558_v24 }
 0x434   : > { %1662 = vadd.xlane.f32.xlu1 %v2908_v48  ;;  %v1542_v50 = vpop.xlane.xlu1 %1541 }
 0x435   : > { %2913 = vpow2.f32 %v1587_v49  ;;  %v1559_v51 = vsub.f32 %v3981_v26, %v1542_v50  ;;  %v1264_v26 = vsub.s32 4, %v3933_v31 }
 0x436   : > { %2579 = vmatpush3.bf16.xpose.msra.mxu1 %v1598_v47 }
 0x437   : > { %v2910_v27 = vpop.eup %2909  ;;  %v1589_v52 = vmul.f32 1.442695, %v1559_v51  ;;  %2580 = vmatprep.subr.bf16.mxu1 %v3327_v18  ;;  %v1265_v63 = vrot.slane %v3941_v41, %v1264_v26  ;;  %v1770_v26 = vadd.s32 4294967240, %v4055_v23 }
 0x438   : > { %1664 = vadd.xlane.f32.xlu0 %v2910_v27  ;;  %1658 = vadd.xlane.f32.xlu1 %v2904_v21  ;;  %v1544_v53 = vpop.xlane.xlu1 %1543  ;;  %v1599_v54 = vpack.c.bf16 %v2910_v27, %v2908_v48 }
 0x439   : > { %2915 = vpow2.f32 %v1589_v52  ;;  %v1560_v55 = vsub.f32 %v3986_v28, %v1544_v53  ;;  %v4028_v1 = vadd.f32 %v1265_v63, %v3950_v56  ;;  %v2867_v56 = vld [vmem:[%s3819_s2] sm:$0xff]   ;;  %v1749_v53 = vadd.s32 4294967264, %v4055_v23 }
 0x43a   : > { %2591 = vmatpush3.bf16.msra.mxu0 %v2867_v56 }
 0x43b   : > { %v2912_v29 = vpop.eup %2911  ;;  %v1591_v57 = vmul.f32 1.442695, %v1560_v55  ;;  %2592 = vmatprep.subr.bf16.mxu0 %v3327_v18 }
 0x43c   : > { %1660 = vadd.xlane.f32.xlu0 %v2906_v44  ;;  %1666 = vadd.xlane.f32.xlu1 %v2912_v29  ;;  %v1872_v60 = vpop.xlane.xlu1 %1871 }
 0x43d   : > { %2917 = vpow2.f32 %v1591_v57  ;;  %v1873_v62 = vmul.f32 0.0078125, %v1872_v60  ;;  %v1752_v57 = vsub.s32 %v1749_v53, %v3933_v31 }
 0x43e   : > { %2581 = vmatpush3.bf16.xpose.msra.mxu1 %v1599_v54  ;;  %2593 = vmatpush3.bf16.msra.mxu0 %v2868_v5  ;;  %v1756_v54 = vadd.s32 4294967256, %v4055_v23 }
 0x43f   : > { %v2914_v58 = vpop.eup %2913  ;;  %2582 = vmatprep.subr.bf16.mxu1 %v3327_v18  ;;  %v4025_v28 = vsub.f32 %v3952_v59, %v1873_v62  ;;  %v1593_v59 = vpack.c.bf16 %v3928_v22, %v3928_v22  ;;  %2594 = vmatprep.subr.bf16.mxu0 %v3327_v18  ;;  %v2871_v22 = vld [vmem:[%s3819_s2 + $0x20] sm:$0xff]  }
 0x440   : > { %1668 = vadd.xlane.f32.xlu0 %v2914_v58  ;;  %v1600_v61 = vpack.c.bf16 %v2914_v58, %v2912_v29  ;;  %v1763_v29 = vadd.s32 4294967248, %v4055_v23  ;;  %v1759_v60 = vsub.s32 %v1756_v54, %v3933_v31 }
 0x441   : > { %v1875_v4 = vmul.f32 %v4025_v28, %v4025_v28 }
 0x442   : > { %2595 = vmatpush3.bf16.msra.mxu0 %v2869_v6 }
 0x443   : > { %v2916_v0 = vpop.eup %2915  ;;  %2596 = vmatprep.subr.bf16.mxu0 %v3327_v18 }
 0x444   : > { %1670 = vadd.xlane.f32.xlu0 %v2916_v0 }
 0x446   : > { %2583 = vmatpush3.bf16.xpose.msra.mxu1 %v1600_v61  ;;  %2597 = vmatpush3.bf16.msra.mxu0 %v2870_v7 }
 0x447   : > { %v2918_v2 = vpop.eup %2917  ;;  %2584 = vmatprep.subr.bf16.mxu1 %v3327_v18  ;;  %2598 = vmatprep.subr.bf16.mxu0 %v3327_v18 }
 0x448   : > { %1996 = vadd.xlane.f32.xlu0 %v4028_v1  ;;  %1672 = vadd.xlane.f32.xlu1 %v2918_v2  ;;  %v1601_v3 = vpack.c.bf16 %v2918_v2, %v2916_v0  ;;  %v1766_v0 = vsub.s32 %v1763_v29, %v3933_v31 }
 0x44a   : > { %2599 = vmatpush3.bf16.msra.mxu0 %v2871_v22 }
 0x44b   : > { %2600 = vmatprep.subr.bf16.mxu0 %v3327_v18 }
 0x44c   : > { %1876 = vadd.xlane.f32.xlu1 %v1875_v4  ;;  %v1773_v4 = vsub.s32 %v1770_v26, %v3933_v31 }
 0x44e   : > { %2585 = vmatpush3.bf16.xpose.msra.mxu1 %v1601_v3  ;;  %2601 = vmatpush3.bf16.msra.mxu0 %v2872_v8  ;;  %v1777_v8 = vadd.s32 4294967232, %v4055_v23 }
 0x44f   : > { %2602 = vmatprep.subr.bf16.mxu0 %v3327_v18 }
 0x452   : > { %2603 = vmatpush3.bf16.msra.mxu0 %v2873_v9 }
 0x453   : > { %2604 = vmatprep.subr.bf16.mxu0 %v3327_v18 }
 0x455   : > { %2587 = vmatmul.mubr.bf16.vlgmr.msra.gmra.mrb[12].mxu1 %v1593_v59 }
 0x456   : > { %2605 = vmatpush3.bf16.msra.mxu0 %v2874_v10 }
 0x457   : > { %2610 = vmatprep.subr.bf16.mxu0 %v3327_v18 }
 0x4a3   : > { %v4052_v11 = vpop.f32.mrb[8].mxu1 }
 0x4a4   : > { %v2550_v12 = vpop.f32.mrb[9].mxu1 }
 0x4a5   : > { %v1362_v13 = vpop.f32.mrb[10].mxu1  ;;  %v1647_v14 = vpop.xlane.xlu1 %1646 }
 0x4a6   : > { %v2551_v15 = vpop.f32.mrb[11].mxu1  ;;  %2919 = vrcp.f32 %v1647_v14  ;;  %v1784_v14 = vadd.s32 4294967224, %v4055_v23 }
 0x4a8   : > { %v1787_v33 = vsub.s32 %v1784_v14, %v3933_v31 }
 0x4a9   : > { %v1643_v16 = vpop.xlane.xlu1 %1642  ;;  %v1649_v17 = vpop.xlane.xlu0 %1648 }
 0x4aa   : > { %2921 = vrcp.f32 %v1643_v16  ;;  %v1791_v16 = vadd.s32 4294967216, %v4055_v23 }
 0x4ab   : > { %2923 = vrcp.f32 %v1649_v17  ;;  %v1780_v17 = vsub.s32 %v1777_v8, %v3933_v31  ;;  %v1885_v8 = vrot.slane %v3941_v41, %v1239_v37  ;;  %v2876_v37 = vld [vmem:[%s3840_s10 + $0x8] sm:$0xff]  }
 0x4ad   : > { %v1645_v20 = vpop.xlane.xlu1 %1644 }
 0x4ae   : > { %2925 = vrcp.f32 %v1645_v20  ;;  %v1798_v20 = vadd.s32 4294967208, %v4055_v23 }
 0x4b0   : > { %v2920_v34 = vpop.eup %2919 }
 0x4b1   : > { %v1739_v48 = vrot.slane %v2920_v34, %v1738_v43 }
 0x4b4   : > { %v2922_v42 = vpop.eup %2921 }
 0x4b5   : > { %v1655_v40 = vpop.xlane.xlu1 %1654  ;;  %v2924_v21 = vpop.eup %2923  ;;  %v1727_v45 = vrot.slane %v2922_v42, %v1726_v25  ;;  %v1812_v25 = vadd.s32 4294967192, %v4055_v23 }
 0x4b6   : > { %v1746_v49 = vrot.slane %v2924_v21, %v1745_v30  ;;  %v1801_v21 = vsub.s32 %v1798_v20, %v3933_v31 }
 0x4b8   : > { %v2926_v44 = vpop.eup %2925 }
 0x4b9   : > { %v1732_v46 = vrot.slane %v2926_v44, %v1731_v36  ;;  %v1657_v47 = vpop.xlane.xlu0 %1656  ;;  %v1651_v24 = vpop.xlane.xlu1 %1650 }
 0x4ba   : > { %2927 = vrcp.f32 %v1651_v24 }
 0x4bb   : > { %v1734_v50 = vsel %vm1733_vm3, %v1732_v46, %v1727_v45  ;;  %2929 = vrcp.f32 %v1655_v40  ;;  %v1794_v40 = vsub.s32 %v1791_v16, %v3933_v31  ;;  %v1808_v45 = vsub.s32 %v1805_v19, %v3933_v31  ;;  %v2879_v19 = vld [vmem:[%s3840_s10 + $0x20] sm:$0xff]  }
 0x4bc   : > { %v1741_v51 = vsel %vm1740_vm4, %v1739_v48, %v1734_v50  ;;  %2931 = vrcp.f32 %v1657_v47  ;;  %v1819_v50 = vadd.s32 4294967184, %v4055_v23  ;;  %vm1831_vm3 = vcmask 1048512  }
 0x4bd   : > { %v1748_v27 = vsel %vm1747_vm5, %v1746_v49, %v1741_v51  ;;  %v1653_v52 = vpop.xlane.xlu0 %1652  ;;  %v1815_v49 = vsub.s32 %v1812_v25, %v3933_v31 }
 0x4be   : > { %2933 = vrcp.f32 %v1653_v52 }
 0x4c1   : > { %v1663_v55 = vpop.xlane.xlu1 %1662 }
 0x4c4   : > { %v2928_v58 = vpop.eup %2927 }
 0x4c5   : > { %v1665_v61 = vpop.xlane.xlu0 %1664  ;;  %v1659_v62 = vpop.xlane.xlu1 %1658  ;;  %v1753_v2 = vrot.slane %v2928_v58, %v1752_v57 }
 0x4c6   : > { %v2930_v63 = vpop.eup %2929  ;;  %2935 = vrcp.f32 %v1659_v62  ;;  %v1826_v62 = vadd.s32 4294967176, %v4055_v23 }
 0x4c7   : > { %v2932_v3 = vpop.eup %2931  ;;  %v1755_v56 = vsel %vm1754_vm6, %v1753_v2, %v1748_v27  ;;  %2937 = vrcp.f32 %v1663_v55  ;;  %v1767_v22 = vrot.slane %v2930_v63, %v1766_v0 }
 0x4c8   : > { %v2934_v59 = vpop.eup %2933  ;;  %2939 = vrcp.f32 %v1665_v61  ;;  %v1774_v9 = vrot.slane %v2932_v3, %v1773_v4  ;;  %v1822_v61 = vsub.s32 %v1819_v50, %v3933_v31 }
 0x4c9   : > { %v1760_v5 = vrot.slane %v2934_v59, %v1759_v60  ;;  %v1661_v6 = vpop.xlane.xlu0 %1660  ;;  %v1667_v7 = vpop.xlane.xlu1 %1666 }
 0x4ca   : > { %2941 = vrcp.f32 %v1661_v6 }
 0x4cb   : > { %v1762_v10 = vsel %vm1761_vm7, %v1760_v5, %v1755_v56  ;;  %2943 = vrcp.f32 %v1667_v7  ;;  %v1829_v56 = vsub.s32 %v1826_v62, %v3933_v31  ;;  %v1365_v5 = vsel %vm1309_vm2, %v3999_v35, 0.0 }
 0x4cc   : > { %v1769_v12 = vsel %vm1768_vm8, %v1767_v22, %v1762_v10  ;;  %v1890_v10 = vrot.slane %v3941_v41, %v1243_v38  ;;  %v2877_v38 = vld [vmem:[%s3840_s10 + $0x10] sm:$0xff]  }
 0x4cd   : > { %v1776_v13 = vsel %vm1775_vm9, %v1774_v9, %v1769_v12  ;;  %v1669_v15 = vpop.xlane.xlu0 %1668 }
 0x4ce   : > { %2945 = vrcp.f32 %v1669_v15 }
 0x4d0   : > { %v2936_v32 = vpop.eup %2935 }
 0x4d1   : > { %v1671_v34 = vpop.xlane.xlu0 %1670  ;;  %v2938_v36 = vpop.eup %2937  ;;  %v1781_v42 = vrot.slane %v2936_v32, %v1780_v17  ;;  %v2875_v17 = vld [vmem:[%s3840_s10] sm:$0xff]   ;;  %v2880_v32 = vld [vmem:[%s3840_s10 + $0x28] sm:$0xff]  }
 0x4d2   : > { %2947 = vrcp.f32 %v1671_v34  ;;  %v2940_v43 = vpop.eup %2939  ;;  %v1795_v51 = vrot.slane %v2938_v36, %v1794_v40  ;;  %v2882_v34 = vld [vmem:[%s3840_s10 + $0x38] sm:$0xff]  }
 0x4d3   : > { %v1783_v44 = vsel %vm1782_vm10, %v1781_v42, %v1776_v13  ;;  %v1802_v52 = vrot.slane %v2940_v43, %v1801_v21 }
 0x4d4   : > { %v2942_v30 = vpop.eup %2941 }
 0x4d5   : > { %v2944_v46 = vpop.eup %2943  ;;  %v1788_v47 = vrot.slane %v2942_v30, %v1787_v33  ;;  %v1997_v24 = vpop.xlane.xlu0 %1996  ;;  %v2881_v33 = vld [vmem:[%s3840_s10 + $0x30] sm:$0xff]  }
 0x4d6   : > { %v1673_v48 = vpop.xlane.xlu1 %1672  ;;  %v1998_v27 = vmul.f32 0.0078125, %v1997_v24  ;;  %v1809_v55 = vrot.slane %v2944_v46, %v1808_v45  ;;  %v2009_v45 = vsub.s32 5, %v3933_v31  ;;  %v2014_v46 = vsub.s32 6, %v3933_v31 }
 0x4d7   : > { %2949 = vrcp.f32 %v1673_v48  ;;  %v1790_v53 = vsel %vm1789_vm11, %v1788_v47, %v1783_v44 }
 0x4d8   : > { %v2946_v54 = vpop.eup %2945  ;;  %v4087_v29 = vsub.f32 %v4028_v1, %v1998_v27  ;;  %v1797_v57 = vsel %vm1796_vm12, %v1795_v51, %v1790_v53  ;;  %v2010_v47 = vrot.slane %v3941_v41, %v2009_v45  ;;  %v2015_v48 = vrot.slane %v3941_v41, %v2014_v46 }
 0x4d9   : > { %v1804_v58 = vsel %vm1803_vm13, %v1802_v52, %v1797_v57  ;;  %v1816_v60 = vrot.slane %v2946_v54, %v1815_v49 }
 0x4da   : > { %v1877_v26 = vpop.xlane.xlu1 %1876  ;;  %v2000_v0 = vmul.f32 %v4087_v29, %v4087_v29  ;;  %v1811_v2 = vsel %vm1810_vm14, %v1809_v55, %v1804_v58 }
 0x4db   : > { %v1878_v63 = vmul.f32 0.0078125, %v1877_v26  ;;  %v1818_v3 = vsel %vm1817_vm15, %v1816_v60, %v1811_v2 }
 0x4dc   : > { %v2948_v4 = vpop.eup %2947  ;;  %2001 = vadd.xlane.f32.xlu1 %v2000_v0 }
 0x4dd   : > { %v1879_v59 = vadd.f32 1e-05, %v1878_v63  ;;  %v1823_v1 = vrot.slane %v2948_v4, %v1822_v61 }
 0x4df   : > { %2951 = vrsqrt.f32 %v1879_v59  ;;  %v1825_v6 = vsel %vm1824_vm1, %v1823_v1, %v1818_v3 }
 0x4e0   : > { %1366 = vadd.xlane.f32.xlu1 %v1365_v5 }
 0x4e1   : > { %v2950_v23 = vpop.eup %2949 }
 0x4e2   : > { %v1830_v7 = vrot.slane %v2950_v23, %v1829_v56 }
 0x4e4   : > { %v1832_v22 = vsel %vm1831_vm3, %v1830_v7, %v1825_v6 }
 0x4e9   : > { %v2952_v9 = vpop.eup %2951 }
 0x4ea   : > { %v1881_v35 = vmul.f32 %v2952_v9, %v4025_v28  ;;  %v2878_v28 = vld [vmem:[%s3840_s10 + $0x18] sm:$0xff]  }
 0x4ec   : > { %v1886_v12 = vmul.f32 %v1885_v8, %v1881_v35  ;;  %v1988_v35 = vrot.slane %v3941_v41, %v1247_v39 }
 0x4ee   : > { %v1891_v13 = vadd.f32 %v1890_v10, %v1886_v12 }
 0x4f0   : > { %vm1892_vm2 = vcmp.ge.f32.partialorder %v1891_v13, 0.0  ;;  %v1893_v14 = vmul.f32 0.2, %v1891_v13 }
 0x4f2   : > { %v1894_v15 = vsel %vm1892_vm2, %v1891_v13, %v1893_v14 }
 0x4f3   : > { %v1895_v16 = vmul.f32 1.4142135, %v1894_v15 }
 0x4f5   : > { %v1896_v20 = vpack.c.bf16 %v1895_v16, %v1895_v16 }
 0x4f7   : > { %2607 = vmatmul.mubr.bf16.vlgmr.msra.gmra.mrb[28].mxu0 %v1896_v20 }
 0x4f8   : > { %2611 = vmatpush3.bf16.msra.mxu0 %v2875_v17  ;;  %2626 = vmatprep.mubr.msk.bf16.mxu0 %vm3328_vm0, %v3327_v18 }
 0x4f9   : > { %2612 = vmatprep.subr.bf16.mxu0 %v3327_v18 }
 0x4fc   : > { %2613 = vmatpush3.bf16.msra.mxu0 %v2876_v37 }
 0x4fd   : > { %2614 = vmatprep.subr.bf16.mxu0 %v3327_v18 }
 0x500   : > { %2615 = vmatpush3.bf16.msra.mxu0 %v2877_v38 }
 0x501   : > { %2616 = vmatprep.subr.bf16.mxu0 %v3327_v18 }
 0x504   : > { %2617 = vmatpush3.bf16.msra.mxu0 %v2878_v28 }
 0x505   : > { %2618 = vmatprep.subr.bf16.mxu0 %v3327_v18 }
 0x508   : > { %2619 = vmatpush3.bf16.msra.mxu0 %v2879_v19 }
 0x509   : > { %2620 = vmatprep.subr.bf16.mxu0 %v3327_v18 }
 0x50c   : > { %2621 = vmatpush3.bf16.msra.mxu0 %v2880_v32 }
 0x50d   : > { %2622 = vmatprep.subr.bf16.mxu0 %v3327_v18 }
 0x510   : > { %2623 = vmatpush3.bf16.msra.mxu0 %v2881_v33 }
 0x511   : > { %2624 = vmatprep.subr.bf16.mxu0 %v3327_v18 }
 0x514   : > { %2625 = vmatpush3.bf16.msra.mxu0 %v2882_v34 }
 0x528   : > { %v1636_v25 = vpop.f32.mrb[12].mxu1 }
 0x529   : > { %v1846_v36 = vmul.f32 %v1832_v22, %v1636_v25  ;;  %v2588_v40 = vpop.f32.mrb[13].mxu1 }
 0x52a   : > { %v1639_v42 = vpop.f32.mrb[14].mxu1 }
 0x52b   : > { %v2589_v43 = vpop.f32.mrb[15].mxu1  ;;  %1847 = vadd.xlane.f32.xlu0 %v1846_v36 }
 0x569   : > { %v2002_v21 = vpop.xlane.xlu1 %2001 }
 0x56a   : > { %v2003_v30 = vmul.f32 0.0078125, %v2002_v21 }
 0x56c   : > { %v2004_v44 = vadd.f32 1e-05, %v2003_v30 }
 0x56e   : > { %2953 = vrsqrt.f32 %v2004_v44 }
 0x578   : > { %v2954_v24 = vpop.eup %2953 }
 0x579   : > { %v2006_v18 = vmul.f32 %v2954_v24, %v4087_v29  ;;  %v1367_v29 = vpop.xlane.xlu1 %1366 }
 0x57a   : > { %2955 = vrcp.f32 %v1367_v29 }
 0x57b   : > { %v2011_v49 = vmul.f32 %v2010_v47, %v2006_v18 }
 0x57d   : > { %v2016_v50 = vadd.f32 %v2015_v48, %v2011_v49 }
 0x57f   : > { %vm2017_vm0 = vcmp.ge.f32.partialorder %v2016_v50, 0.0  ;;  %v2018_v51 = vmul.f32 0.2, %v2016_v50 }
 0x581   : > { %v2019_v27 = vsel %vm2017_vm0, %v2016_v50, %v2018_v51 }
 0x582   : > { %v2020_v52 = vmul.f32 1.4142135, %v2019_v27 }
 0x584   : > { %v2021_v53 = vpack.c.bf16 %v2020_v52, %v2020_v52  ;;  %v2956_v3 = vpop.eup %2955 }
 0x585   : > { %v1370_v6 = vmul.f32 %v2956_v3, %v4052_v11  ;;  %v2112_v11 = vsub.s32 7, %v3933_v31 }
 0x586   : > { %2627 = vmatmul.mubr.bf16.vlgmr.msra.gmra.mrb[32].mxu0 %v2021_v53 }
 0x587   : > { %v2113_v20 = vrot.slane %v3941_v41, %v2112_v11 }
 0x5b8   : > { %v1848_v54 = vpop.xlane.xlu0 %1847 }
 0x5b9   : > { %v1850_v55 = vmul.f32 0.0078125, %v1848_v54 }
 0x5bb   : > { %v1851_v57 = vsub.f32 %v1846_v36, %v1850_v55 }
 0x5bd   : > { %v1852_v26 = vmul.f32 %v1851_v57, %v1851_v57 }
 0x5bf   : > { %1853 = vadd.xlane.f32.xlu0 %v1852_v26 }
 0x5ca   : > { %v1979_v58 = vpop.f32.mrb[28].mxu0 }
 0x5cb   : > { %v2608_v60 = vpop.f32.mrb[29].mxu0  ;;  %v1989_v12 = vadd.f32 %v1988_v35, %v1979_v58 }
 0x5cc   : > { %v1982_v61 = vpop.f32.mrb[30].mxu0 }
 0x5cd   : > { %v2609_v62 = vpop.f32.mrb[31].mxu0  ;;  %v2483_v13 = vmul.f32 -1.442695, %v1989_v12 }
 0x64c   : > { %v1854_v63 = vpop.xlane.xlu0 %1853 }
 0x64d   : > { %v1855_v0 = vmul.f32 0.0078125, %v1854_v63 }
 0x64f   : > { %v1856_v2 = vadd.f32 1e-05, %v1855_v0 }
 0x651   : > { %2957 = vrsqrt.f32 %v1856_v2 }
 0x652   : > { %2959 = vpow2.f32 %v2483_v13 }
 0x659   : > { %v2104_v4 = vpop.f32.mrb[32].mxu0 }
 0x65a   : > { %v2628_v59 = vpop.f32.mrb[33].mxu0  ;;  %v2114_v38 = vadd.f32 %v2113_v20, %v2104_v4 }
 0x65b   : > { %v2958_v1 = vpop.eup %2957  ;;  %v2107_v56 = vpop.f32.mrb[34].mxu0 }
 0x65c   : > { %v2629_v5 = vpop.f32.mrb[35].mxu0  ;;  %v1858_v23 = vmul.f32 %v2958_v1, %v1851_v57  ;;  %v2960_v14 = vpop.eup %2959  ;;  %v2116_v28 = vmul.f32 0.2, %v2114_v38  ;;  %vm2115_vm4 = vcmp.ge.f32.partialorder %v2114_v38, 0.0 }
 0x65d   : > { %v1993_v15 = vadd.f32 1.0, %v2960_v14 }
 0x65e   : > { %v1859_v7 = vadd.f32 %v1858_v23, %v1370_v6  ;;  %v2117_v32 = vsel %vm2115_vm4, %v2114_v38, %v2116_v28 }
 0x65f   : > { %2961 = vrcp.f32 %v1993_v15  ;;  %v2118_v31 = vmul.f32 1.4142135, %v2117_v32 }
 0x660   : > { %1860 = vadd.xlane.f32.xlu0 %v1859_v7 }
 0x669   : > { %v2962_v39 = vpop.eup %2961 }
 0x66a   : > { %v2119_v33 = vadd.f32 1.0, %v2962_v39 }
 0x6ed   : > { %v1861_v22 = vpop.xlane.xlu0 %1860 }
 0x6ee   : > { %v1862_v8 = vmul.f32 0.0078125, %v1861_v22 }
 0x6f0   : > { %v1863_v9 = vsub.f32 %v1859_v7, %v1862_v8 }
 0x6f2   : > { %v1864_v10 = vmul.f32 %v1863_v9, %v1863_v9 }
 0x6f4   : > { %1865 = vadd.xlane.f32.xlu1 %v1864_v10 }
 0x781   : > { %v1866_v16 = vpop.xlane.xlu1 %1865 }
 0x782   : > { %v1867_v17 = vmul.f32 0.0078125, %v1866_v16 }
 0x784   : > { %v1868_v37 = vadd.f32 1e-05, %v1867_v17 }
 0x786   : > { %2963 = vrsqrt.f32 %v1868_v37 }
 0x790   : > { %v2964_v19 = vpop.eup %2963 }
 0x791   : > { %v1870_v34 = vmul.f32 %v2964_v19, %v1863_v9 }
 0x793   : > { %v2120_v25 = vmul.f32 %v2119_v33, %v1870_v34 }
 0x795   : > { %v2121_v36 = vadd.f32 %v2120_v25, %v2118_v31 }
 0x797   : > { %2122 = vst [vmem:[#allocation2] sm:$0xff] %v2121_v36  ;;  %2123 = vst [vmem:[%s608_s7] sm:$0xff] %v2121_v36 }
 0x798   : > { %3188 = shalt.err (!%p3185_p8)
}
 0x799   : > { %s3189_s27 = scalar_lea.hbm %s4137_s16, 128  ;;  %s3193_s11 = scalar_lea.hbm %s4320_s24, 256 }
 0x79a   : > { %p3190_p4 = scmp.ne.s32.totalorder %s4137_s16, %s3189_s27  ;;  %p3194_p9 = scmp.lt.u32.totalorder %s4137_s16, %s4320_s24 }
 0x79b   : > { %p3195_p13 = scmp.lt.u32.totalorder %s3193_s11, %s3189_s27  ;;  %p3197_p1 = scmp.lt.u32.totalorder %s3189_s27, %s4137_s16 }
 0x79c   : > { %p3191_p11 = pnand %p3190_p4, %p4321_p5 }
 0x79d   : > { %p3196_p2 = por %p3195_p13, %p3194_p9 }
 0x79e   : > { %p3192_p10 = pneg %p3191_p11 }
 0x79f   : > { %p3198_p3 = por %p3197_p1, %p3196_p2 }
 0x7a1   : > { %p3199_p7 = pnand %p3198_p3, %p3192_p10 }
 0x7a3   : > { %3202 = shalt.err (!%p3199_p7)
}
 0x7a4   : > { %2645 = dma.vmem_to_hbm [thread:$0]  (%p4321_p5), %s4139_s5, 128, %s4137_s16, %s2125_s15  }
 0x7a5 PF: > { %s4322_s10 = sld [smem:[#allocation28_spill]]  ;;  %s4323_s7 = sld [smem:[#allocation24_spill]] }
 0x7a6   : > { %s4324_s20 = sld [smem:[#allocation37_spill]] }
 0x7ab   : > { %p2674_p12 = scmp.ge.s32.totalorder %s4322_s10, 2  ;;  %s2150_s19 = sand.u32 1, %s4323_s7  }
 0x7ac   : > { %p4325_p0 = scmp.ne.s32.totalorder %s4324_s20, 0  ;;  %s2151_s23 = scalar_lea.sflag [#allocation5], %s2150_s19 }
 0x7ae   : > { %p2670_p6 = pnand %p2674_p12, %p4325_p0 }
 0x7b0   : > { %3268 = dma.done.wait (!%p2670_p6), %s2151_s23, 128  }
 0x7b1   : > { %3270 = vsyncadd (!%p2670_p6), %s2151_s23, 4294967168  ;;  %s34_s19 = sadd.s32 1, %s4322_s10   ;;  %s4326_s30 = sld [smem:[#allocation22_spill]] }
 0x7b2   : > { %p31_p8 = scmp.ge.s32.totalorder %s34_s19, 10   ;;  %s4327_s10 = sld [smem:[#allocation23_spill]] }
 0x7b3   : > { %s4328_s11 = sld [smem:[#allocation33_spill]]  ;;  %s4329_s12 = sld [smem:[#allocation25_spill]] }
 0x7b4   : > { %s4330_s22 = sld [smem:[#allocation34_spill]]  ;;  %s4331_s29 = sld [smem:[#allocation30_spill]] }
 0x7b5   : > { %s4332_s21 = sld [smem:[#allocation31_spill]]  ;;  %s4333_s13 = smov %s3293_s14 }
 0x7b6   : > { %s4335_s15 = smov %s3305_s17  ;;  %s4336_s16 = smov %s3309_s18 }
 0x7b7   :  { %33 = sbr.rel (!%p31_p8) target bundleno = 22 (0x16), region = 183 }
 0x7ba   : > { %s4334_s14 = smov %s4330_s22  ;;  %s4337_s17 = smov %s4331_s29 }
 0x7bb   : > { %s4338_s18 = smov %s4332_s21 }
 0x7be   :  { %2156 = vsyncpa [#allocation4], 1 }
 0x7bf   :  { %2158 = vsyncpa [#allocation4 + $0x1], 1 }
 0x7c0   :  { %2159 = vsyncpa [#allocation7], 1 }
 0x7c1   :  { %2161 = vsyncpa [#allocation7 + $0x1], 1 }
 0x7c2   :  { %2162 = vsyncpa [#allocation10], 1 }
 0x7c3   :  { %2164 = vsyncpa [#allocation10 + $0x1], 1 }
 0x7c4   :  { %2165 = vsyncpa [#allocation13], 1 }
 0x7c5   :  { %2167 = vsyncpa [#allocation13 + $0x1], 1 }
 0x7c6   :  { %2168 = vsyncpa [#allocation5], 1 }
 0x7c7   :  { %2170 = vsyncpa [#allocation5 + $0x1], 1 }

</bundles_post_ra>
